<compile_context>
chip_gen: v6e
topology: v6e:2x2x1
jax: 0.10.0
libtpu: 0.0.40
codegen_flags: <defaults>
</compile_context>

<pallas_src>
from functools import partial

import numpy as np
import jax
import jax.numpy as jnp
from jax import lax
from jax.experimental import pallas as pl
from jax.experimental.pallas import tpu as pltpu


# ----------------------------------------------------------------------------
# Parameter construction (replicates OutputTucker.__init__ semantics in numpy)
# ----------------------------------------------------------------------------
def gating(gate, threshold=0.01):
    left = [i for i in range(gate.shape[0]) if abs(gate[i]) >= threshold]
    if len(left) == 0:
        left = [int(np.argmax(np.abs(gate)))]
    return left


def _weight_norm_eff(v, g):
    # per-output-filter Frobenius norm, as in: w[i] / ||w[i]|| * g[i]
    flat = v.reshape(v.shape[0], -1)
    norms = np.linalg.norm(flat, axis=1)
    return (v / norms[:, None, None, None] * g[:, None, None, None]).astype(np.float32)


def faster_check(rankin, rankout, k, input_dim, output_dim):
    return (rankin * input_dim + rankin * k * k * rankout + rankout * output_dim
            < input_dim * k * k * output_dim)


def build_output_tucker_weights(rng, input_dim, output_dim, full_rin, full_rout, k):
    """Synthesize weight_v / weight_g for compress/core/restore and apply the
    gating + weight-norm math from OutputTucker.__init__ (faster path)."""
    compress_v = rng.standard_normal((full_rin, input_dim, 1, 1)).astype(np.float32)
    compress_g = rng.uniform(-1.0, 1.0, (full_rin,)).astype(np.float32)
    compress_g[1] = 0.001  # force one pruned input-rank channel

    core_v = rng.standard_normal((full_rout, full_rin, k, k)).astype(np.float32)
    core_g = rng.uniform(-1.0, 1.0, (full_rout,)).astype(np.float32)
    core_g[3] = 0.0        # force one pruned output-rank channel

    restore_v = rng.standard_normal((output_dim, full_rout, 1, 1)).astype(np.float32)
    restore_g = rng.uniform(-1.0, 1.0, (output_dim,)).astype(np.float32)

    cin, cout = gating(compress_g), gating(core_g)
    rankin, rankout = len(cin), len(cout)
    assert faster_check(rankin, rankout, k, input_dim, output_dim)

    # compress: select filters then normalize (identical to module code)
    w_compress = _weight_norm_eff(compress_v[cin], compress_g[cin])          # (Rin, Cin, 1, 1)
    # core: normalize full filters (norm over ALL input channels) then slice
    w_core = _weight_norm_eff(core_v, core_g)[:, cin][cout]                  # (Rout, Rin, K, K)
    # restore: normalize full filters then slice input channels
    w_restore = _weight_norm_eff(restore_v, restore_g)[:, cout]              # (Cout, Rout, 1, 1)
    return w_compress, w_core, w_restore


# ----------------------------------------------------------------------------
# Fused Pallas kernel: compress (1x1) -> core (KxK, pad/stride/dilation) -> restore (1x1)
# ----------------------------------------------------------------------------
def _tucker_kernel(x_ref, wc_ref, wk_ref, wr_ref, o_ref, comp_pad,
                   *, K, stride, padding, dilation, Ho, Wo, H, W, Nb):
    Rin = wc_ref.shape[1]                     # rank-in (zero-padded to mult of 8)
    _, Hp, Wp, _ = comp_pad.shape

    # --- compress: 1x1 conv == channel matmul over Nb*H*W rows ---------------
    x = x_ref[...]                                                   # (Nb,H,W,Cin)
    comp = jnp.dot(x.reshape(Nb * H * W, x.shape[-1]), wc_ref[...],
                   preferred_element_type=jnp.float32)               # (Nb*H*W,Rin)

    # --- stage into zero-padded scratch --------------------------------------
    # Only the thin border strips are (re)zeroed each step (interior is fully
    # overwritten every step). This stays correct even if the "parallel" grid
    # axis is sharded across TensorCores (each core has its own scratch), which
    # a program_id==0 "zero once" guard would not.
    if padding > 0:
        comp_pad[:, :padding, :, :] = jnp.zeros((Nb, padding, Wp, Rin), jnp.float32)
        comp_pad[:, padding + H:, :, :] = jnp.zeros((Nb, padding, Wp, Rin), jnp.float32)
        comp_pad[:, :, :padding, :] = jnp.zeros((Nb, Hp, padding, Rin), jnp.float32)
        comp_pad[:, :, padding + W:, :] = jnp.zeros((Nb, Hp, padding, Rin), jnp.float32)
    comp_pad[:, padding:padding + H, padding:padding + W, :] = (
        comp.reshape(Nb, H, W, Rin))
    cp = comp_pad[...]                                               # (Nb,Hp,Wp,Rin)

    # --- core: KxK conv with ALL taps folded into ONE matmul ----------------
    # contraction dim = K*K*Rin (~72) instead of K*K tiny Rin-contraction dots.
    taps = []
    for kh in range(K):
        for kw in range(K):
            h0 = kh * dilation
            w0 = kw * dilation
            # TODO(synk): for stride > 1, pre-deinterleave cp into stride*stride
            # phase planes once instead of K*K strided slices.
            taps.append(cp[:, h0:h0 + stride * (Ho - 1) + 1:stride,
                            w0:w0 + stride * (Wo - 1) + 1:stride, :])  # (Nb,Ho,Wo,Rin)
    win = jnp.concatenate(taps, axis=-1)                             # (Nb,Ho,Wo,K*K*Rin)
    acc = jnp.dot(win.reshape(Nb * Ho * Wo, K * K * Rin), wk_ref[...],
                  preferred_element_type=jnp.float32)                # (Nb*Ho*Wo,Rout)

    # --- restore: 1x1 conv, computed transposed so the output store is
    #     lane-dense: out_t[c, m] = sum_r wr[c, r] * acc[m, r]
    out_t = lax.dot_general(wr_ref[...], acc, (((1,), (1,)), ((), ())),
                            preferred_element_type=jnp.float32)      # (Cout, Nb*Ho*Wo)
    hw = Ho * Wo
    for i in range(Nb):
        o_ref[i] = out_t[:, i * hw:(i + 1) * hw].astype(o_ref.dtype)


def _round_up(v, m):
    return ((v + m - 1) // m) * m


def _pick_batch_block(N, per_image_bytes, budget=4 << 20, max_nb=8):
    best = 1
    for d in range(1, min(N, max_nb) + 1):
        if N % d == 0 and d * per_image_bytes <= budget:
            best = d
    return best


def output_tucker_forward(x_nchw, w_compress, w_core, w_restore,
                          stride=1, padding=1, dilation=1, batch_block=None):
    N, Cin, H, W = x_nchw.shape
    Rin = w_compress.shape[0]
    Rout, _, K, _ = w_core.shape
    Cout = w_restore.shape[0]
    Ho = (H + 2 * padding - dilation * (K - 1) - 1) // stride + 1
    Wo = (W + 2 * padding - dilation * (K - 1) - 1) // stride + 1
    Hp, Wp = H + 2 * padding, W + 2 * padding

    # pad the Tucker ranks to sublane multiples; the extra rows/cols are zero
    # so every matmul result is numerically unchanged.
    Rin_p, Rout_p = _round_up(Rin, 8), _round_up(Rout, 8)

    # layout plumbing (glue): NCHW -> NHWC for x; matmul-friendly weight layouts.
    x_nhwc = jnp.transpose(x_nchw, (0, 2, 3, 1))                     # (N,H,W,Cin)

    wc = jnp.transpose(w_compress[:, :, 0, 0], (1, 0))               # (Cin, Rin)
    wc = jnp.pad(wc, ((0, 0), (0, Rin_p - Rin)))                     # (Cin, Rin_p)

    wk = jnp.transpose(w_core, (2, 3, 1, 0))                         # (K,K,Rin,Rout)
    wk = jnp.pad(wk, ((0, 0), (0, 0), (0, Rin_p - Rin), (0, Rout_p - Rout)))
    wk = wk.reshape(K * K * Rin_p, Rout_p)                           # tap-major, Rin minor

    wr = jnp.pad(w_restore[:, :, 0, 0], ((0, 0), (0, Rout_p - Rout)))  # (Cout, Rout_p)

    # per-image VMEM footprint (f32): input + padded scratch + windows + output
    per_img = 4 * (H * W * Cin + Hp * Wp * Rin_p
                   + Ho * Wo * K * K * Rin_p + Ho * Wo * Cout)
    Nb = batch_block if batch_block is not None else _pick_batch_block(N, per_img)
    assert N % Nb == 0, "batch_block must divide N"

    step_bytes = Nb * per_img
    vmem_limit = int(min(max(4 * step_bytes, 32 * (1 << 20)), 64 * (1 << 20)))

    kernel = partial(_tucker_kernel, K=K, stride=stride, padding=padding,
                     dilation=dilation, Ho=Ho, Wo=Wo, H=H, W=W, Nb=Nb)

    out_flat = pl.pallas_call(
        kernel,
        out_shape=jax.ShapeDtypeStruct((N, Cout, Ho * Wo), x_nhwc.dtype),
        grid_spec=pltpu.PrefetchScalarGridSpec(
            num_scalar_prefetch=0,
            grid=(N // Nb,),
            in_specs=[
                pl.BlockSpec((Nb, H, W, Cin), lambda b: (b, 0, 0, 0)),
                pl.BlockSpec((Cin, Rin_p), lambda b: (0, 0)),
                pl.BlockSpec((K * K * Rin_p, Rout_p), lambda b: (0, 0)),
                pl.BlockSpec((Cout, Rout_p), lambda b: (0, 0)),
            ],
            out_specs=pl.BlockSpec((Nb, Cout, Ho * Wo), lambda b: (b, 0, 0)),
            scratch_shapes=[pltpu.VMEM((Nb, Hp, Wp, Rin_p), jnp.float32)],
        ),
        compiler_params=pltpu.CompilerParams(
            dimension_semantics=("parallel",),
            vmem_limit_bytes=vmem_limit),
    )(x_nhwc, wc, wk, wr)

    # TODO(synk): for large images on v7x (64 MiB VMEM) add a second grid axis
    # tiling Ho rows with a (K-1)*dilation halo on the input block.
    return out_flat.reshape(N, Cout, Ho, Wo)                         # NCHW, no transpose


# ----------------------------------------------------------------------------
# Pure-JAX reference (NCHW, matches nn.Conv2d semantics) for correctness check
# ----------------------------------------------------------------------------
def reference_forward(x, w_compress, w_core, w_restore,
                      stride=1, padding=1, dilation=1):
    dn = ('NCHW', 'OIHW', 'NCHW')
    y = jax.lax.conv_general_dilated(x, w_compress, (1, 1), 'VALID',
                                     dimension_numbers=dn)
    y = jax.lax.conv_general_dilated(y, w_core, (stride, stride),
                                     [(padding, padding), (padding, padding)],
                                     rhs_dilation=(dilation, dilation),
                                     dimension_numbers=dn)
    y = jax.lax.conv_general_dilated(y, w_restore, (1, 1), 'VALID',
                                     dimension_numbers=dn)
    return y


if __name__ == "__main__":
    # small, module-consistent shapes
    N, input_dim, H, W = 2, 16, 8, 8
    output_dim, full_rin, full_rout, K = 16, 8, 8, 3
    stride, padding, dilation = 1, 1, 1

    rng = np.random.RandomState(0)
    w_compress, w_core, w_restore = build_output_tucker_weights(
        rng, input_dim, output_dim, full_rin, full_rout, K)

    key = jax.random.PRNGKey(0)
    x = jax.random.normal(key, (N, input_dim, H, W), dtype=jnp.float32)

    out = output_tucker_forward(x, jnp.asarray(w_compress), jnp.asarray(w_core),
                                jnp.asarray(w_restore),
                                stride=stride, padding=padding, dilation=dilation)
    out = jax.block_until_ready(out)

    ref = reference_forward(x, jnp.asarray(w_compress), jnp.asarray(w_core),
                            jnp.asarray(w_restore),
                            stride=stride, padding=padding, dilation=dilation)
    np.testing.assert_allclose(np.asarray(out), np.asarray(ref), rtol=1e-4, atol=1e-4)

    print("KERNEL_OK")
</pallas_src>

<mosaic_0001>
module attributes {stable_mosaic.version = 11 : i64} {
  func.func @_tucker_kernel(%arg0: i32, %arg1: memref<2x8x8x16xf32, #tpu.memory_space<vmem>>, %arg2: memref<16x8xf32, #tpu.memory_space<vmem>>, %arg3: memref<72x8xf32, #tpu.memory_space<vmem>>, %arg4: memref<16x8xf32, #tpu.memory_space<vmem>>, %arg5: memref<2x16x64xf32, #tpu.memory_space<vmem>>, %arg6: memref<2x10x10x8xf32, #tpu.memory_space<vmem>>) attributes {dimension_semantics = [#tpu.dimension_semantics<parallel>], iteration_bounds = array<i64: 1>, scalar_prefetch = 0 : i64, scratch_operands = 1 : i64, tpu.core_type = #tpu.core_type<tc>, window_params = [{transform_indices = @transform_0, window_bounds = array<i64: 2, 8, 8, 16>}, {pipeline_mode = #tpu.pipeline_mode<synchronous>, transform_indices = @transform_1, window_bounds = array<i64: 16, 8>}, {pipeline_mode = #tpu.pipeline_mode<synchronous>, transform_indices = @transform_2, window_bounds = array<i64: 72, 8>}, {pipeline_mode = #tpu.pipeline_mode<synchronous>, transform_indices = @transform_3, window_bounds = array<i64: 16, 8>}, {transform_indices = @transform_4, window_bounds = array<i64: 2, 16, 64>}]} {
    %c0 = arith.constant 0 : index
    %c0_0 = arith.constant 0 : index
    %c0_1 = arith.constant 0 : index
    %c0_2 = arith.constant 0 : index
    %0 = vector.load %arg1[%c0, %c0_0, %c0_1, %c0_2] : memref<2x8x8x16xf32, #tpu.memory_space<vmem>>, vector<2x8x8x16xf32>
    %1 = vector.shape_cast %0 : vector<2x8x8x16xf32> to vector<128x16xf32>
    %c0_3 = arith.constant 0 : index
    %c0_4 = arith.constant 0 : index
    %2 = vector.load %arg2[%c0_3, %c0_4] : memref<16x8xf32, #tpu.memory_space<vmem>>, vector<16x8xf32>
    %cst = arith.constant dense<0.000000e+00> : vector<128x8xf32>
    %3 = tpu.matmul %1, %2, %cst {dimension_numbers = #tpu.dot_dimension_numbers<[1], [0], [0], [1], [0, 0, 1, 1], [], []>} : vector<128x16xf32>, vector<16x8xf32>, vector<128x8xf32> -> vector<128x8xf32>
    %cst_5 = arith.constant 0.000000e+00 : f32
    %4 = vector.broadcast %cst_5 : f32 to vector<2x1x10x8xf32>
    %c0_6 = arith.constant 0 : index
    %c0_7 = arith.constant 0 : index
    %c0_8 = arith.constant 0 : index
    %c0_9 = arith.constant 0 : index
    %5 = vector.load %arg6[%c0_6, %c0_7, %c0_8, %c0_9] : memref<2x10x10x8xf32, #tpu.memory_space<vmem>>, vector<2x1x10x8xf32>
    tpu.vector_store %arg6[%c0_6, %c0_7, %c0_8, %c0_9], %4 {strides = array<i32>} : memref<2x10x10x8xf32, #tpu.memory_space<vmem>>, vector<2x1x10x8xf32>,
    %cst_10 = arith.constant 0.000000e+00 : f32
    %6 = vector.broadcast %cst_10 : f32 to vector<2x1x10x8xf32>
    %c0_11 = arith.constant 0 : index
    %c9 = arith.constant 9 : index
    %c0_12 = arith.constant 0 : index
    %c0_13 = arith.constant 0 : index
    %7 = vector.load %arg6[%c0_11, %c9, %c0_12, %c0_13] : memref<2x10x10x8xf32, #tpu.memory_space<vmem>>, vector<2x1x10x8xf32>
    tpu.vector_store %arg6[%c0_11, %c9, %c0_12, %c0_13], %6 {strides = array<i32>} : memref<2x10x10x8xf32, #tpu.memory_space<vmem>>, vector<2x1x10x8xf32>,
    %cst_14 = arith.constant 0.000000e+00 : f32
    %8 = vector.broadcast %cst_14 : f32 to vector<2x10x1x8xf32>
    %c0_15 = arith.constant 0 : index
    %c0_16 = arith.constant 0 : index
    %c0_17 = arith.constant 0 : index
    %c0_18 = arith.constant 0 : index
    %9 = vector.load %arg6[%c0_15, %c0_16, %c0_17, %c0_18] : memref<2x10x10x8xf32, #tpu.memory_space<vmem>>, vector<2x10x1x8xf32>
    tpu.vector_store %arg6[%c0_15, %c0_16, %c0_17, %c0_18], %8 {strides = array<i32>} : memref<2x10x10x8xf32, #tpu.memory_space<vmem>>, vector<2x10x1x8xf32>,
    %cst_19 = arith.constant 0.000000e+00 : f32
    %10 = vector.broadcast %cst_19 : f32 to vector<2x10x1x8xf32>
    %c0_20 = arith.constant 0 : index
    %c0_21 = arith.constant 0 : index
    %c9_22 = arith.constant 9 : index
    %c0_23 = arith.constant 0 : index
    %11 = vector.load %arg6[%c0_20, %c0_21, %c9_22, %c0_23] : memref<2x10x10x8xf32, #tpu.memory_space<vmem>>, vector<2x10x1x8xf32>
    tpu.vector_store %arg6[%c0_20, %c0_21, %c9_22, %c0_23], %10 {strides = array<i32>} : memref<2x10x10x8xf32, #tpu.memory_space<vmem>>, vector<2x10x1x8xf32>,
    %12 = vector.shape_cast %3 : vector<128x8xf32> to vector<2x8x8x8xf32>
    %c0_24 = arith.constant 0 : index
    %c1 = arith.constant 1 : index
    %c1_25 = arith.constant 1 : index
    %c0_26 = arith.constant 0 : index
    %13 = vector.load %arg6[%c0_24, %c1, %c1_25, %c0_26] : memref<2x10x10x8xf32, #tpu.memory_space<vmem>>, vector<2x8x8x8xf32>
    tpu.vector_store %arg6[%c0_24, %c1, %c1_25, %c0_26], %12 {strides = array<i32>} : memref<2x10x10x8xf32, #tpu.memory_space<vmem>>, vector<2x8x8x8xf32>,
    %c0_27 = arith.constant 0 : index
    %c0_28 = arith.constant 0 : index
    %c0_29 = arith.constant 0 : index
    %c0_30 = arith.constant 0 : index
    %14 = vector.load %arg6[%c0_27, %c0_28, %c0_29, %c0_30] : memref<2x10x10x8xf32, #tpu.memory_space<vmem>>, vector<2x10x10x8xf32>
    %15 = vector.extract_strided_slice %14 {offsets = [0, 0, 0, 0], sizes = [2, 8, 8, 8], strides = [1, 1, 1, 1]} : vector<2x10x10x8xf32> to vector<2x8x8x8xf32>
    %16 = vector.extract_strided_slice %14 {offsets = [0, 0, 1, 0], sizes = [2, 8, 8, 8], strides = [1, 1, 1, 1]} : vector<2x10x10x8xf32> to vector<2x8x8x8xf32>
    %17 = vector.extract_strided_slice %14 {offsets = [0, 0, 2, 0], sizes = [2, 8, 8, 8], strides = [1, 1, 1, 1]} : vector<2x10x10x8xf32> to vector<2x8x8x8xf32>
    %18 = vector.extract_strided_slice %14 {offsets = [0, 1, 0, 0], sizes = [2, 8, 8, 8], strides = [1, 1, 1, 1]} : vector<2x10x10x8xf32> to vector<2x8x8x8xf32>
    %19 = vector.extract_strided_slice %14 {offsets = [0, 1, 1, 0], sizes = [2, 8, 8, 8], strides = [1, 1, 1, 1]} : vector<2x10x10x8xf32> to vector<2x8x8x8xf32>
    %20 = vector.extract_strided_slice %14 {offsets = [0, 1, 2, 0], sizes = [2, 8, 8, 8], strides = [1, 1, 1, 1]} : vector<2x10x10x8xf32> to vector<2x8x8x8xf32>
    %21 = vector.extract_strided_slice %14 {offsets = [0, 2, 0, 0], sizes = [2, 8, 8, 8], strides = [1, 1, 1, 1]} : vector<2x10x10x8xf32> to vector<2x8x8x8xf32>
    %22 = vector.extract_strided_slice %14 {offsets = [0, 2, 1, 0], sizes = [2, 8, 8, 8], strides = [1, 1, 1, 1]} : vector<2x10x10x8xf32> to vector<2x8x8x8xf32>
    %23 = vector.extract_strided_slice %14 {offsets = [0, 2, 2, 0], sizes = [2, 8, 8, 8], strides = [1, 1, 1, 1]} : vector<2x10x10x8xf32> to vector<2x8x8x8xf32>
    %24 = tpu.concatenate %15, %16, %17, %18, %19, %20, %21, %22, %23 in 3 : vector<2x8x8x8xf32>, vector<2x8x8x8xf32>, vector<2x8x8x8xf32>, vector<2x8x8x8xf32>, vector<2x8x8x8xf32>, vector<2x8x8x8xf32>, vector<2x8x8x8xf32>, vector<2x8x8x8xf32>, vector<2x8x8x8xf32> -> vector<2x8x8x72xf32>
    %25 = vector.shape_cast %24 : vector<2x8x8x72xf32> to vector<128x72xf32>
    %c0_31 = arith.constant 0 : index
    %c0_32 = arith.constant 0 : index
    %26 = vector.load %arg3[%c0_31, %c0_32] : memref<72x8xf32, #tpu.memory_space<vmem>>, vector<72x8xf32>
    %cst_33 = arith.constant dense<0.000000e+00> : vector<128x8xf32>
    %27 = tpu.matmul %25, %26, %cst_33 {dimension_numbers = #tpu.dot_dimension_numbers<[1], [0], [0], [1], [0, 0, 1, 1], [], []>} : vector<128x72xf32>, vector<72x8xf32>, vector<128x8xf32> -> vector<128x8xf32>
    %c0_34 = arith.constant 0 : index
    %c0_35 = arith.constant 0 : index
    %28 = vector.load %arg4[%c0_34, %c0_35] : memref<16x8xf32, #tpu.memory_space<vmem>>, vector<16x8xf32>
    %cst_36 = arith.constant dense<0.000000e+00> : vector<16x128xf32>
    %29 = tpu.matmul %28, %27, %cst_36 {dimension_numbers = #tpu.dot_dimension_numbers<[1], [1], [0], [0], [0, 0, 1, 0], [], []>} : vector<16x8xf32>, vector<128x8xf32>, vector<16x128xf32> -> vector<16x128xf32>
    %30 = vector.extract_strided_slice %29 {offsets = [0, 0], sizes = [16, 64], strides = [1, 1]} : vector<16x128xf32> to vector<16x64xf32>
    %c0_37 = arith.constant 0 : index
    %c0_38 = arith.constant 0 : index
    %c0_39 = arith.constant 0 : index
    %31 = vector.load %arg5[%c0_37, %c0_38, %c0_39] : memref<2x16x64xf32, #tpu.memory_space<vmem>>, vector<1x16x64xf32>
    %32 = vector.shape_cast %31 : vector<1x16x64xf32> to vector<16x64xf32>
    %33 = vector.shape_cast %30 : vector<16x64xf32> to vector<1x16x64xf32>
    tpu.vector_store %arg5[%c0_37, %c0_38, %c0_39], %33 {strides = array<i32>} : memref<2x16x64xf32, #tpu.memory_space<vmem>>, vector<1x16x64xf32>,
    %34 = vector.extract_strided_slice %29 {offsets = [0, 64], sizes = [16, 64], strides = [1, 1]} : vector<16x128xf32> to vector<16x64xf32>
    %c1_40 = arith.constant 1 : index
    %c0_41 = arith.constant 0 : index
    %c0_42 = arith.constant 0 : index
    %35 = vector.load %arg5[%c1_40, %c0_41, %c0_42] : memref<2x16x64xf32, #tpu.memory_space<vmem>>, vector<1x16x64xf32>
    %36 = vector.shape_cast %35 : vector<1x16x64xf32> to vector<16x64xf32>
    %37 = vector.shape_cast %34 : vector<16x64xf32> to vector<1x16x64xf32>
    tpu.vector_store %arg5[%c1_40, %c0_41, %c0_42], %37 {strides = array<i32>} : memref<2x16x64xf32, #tpu.memory_space<vmem>>, vector<1x16x64xf32>,
    return
  }
  func.func @transform_0(%arg0: i32) -> (i32, i32, i32, i32) {
    %c0_i32 = arith.constant 0 : i32
    %c0_i32_0 = arith.constant 0 : i32
    %c0_i32_1 = arith.constant 0 : i32
    %c0_i32_2 = arith.constant 0 : i32
    return %arg0, %c0_i32, %c0_i32_0, %c0_i32_1 : i32, i32, i32, i32
  }
  func.func @transform_1(%arg0: i32) -> (i32, i32) {
    %c0_i32 = arith.constant 0 : i32
    %c0_i32_0 = arith.constant 0 : i32
    %c0_i32_1 = arith.constant 0 : i32
    return %c0_i32, %c0_i32_0 : i32, i32
  }
  func.func @transform_2(%arg0: i32) -> (i32, i32) {
    %c0_i32 = arith.constant 0 : i32
    %c0_i32_0 = arith.constant 0 : i32
    %c0_i32_1 = arith.constant 0 : i32
    return %c0_i32, %c0_i32_0 : i32, i32
  }
  func.func @transform_3(%arg0: i32) -> (i32, i32) {
    %c0_i32 = arith.constant 0 : i32
    %c0_i32_0 = arith.constant 0 : i32
    %c0_i32_1 = arith.constant 0 : i32
    return %c0_i32, %c0_i32_0 : i32, i32
  }
  func.func @transform_4(%arg0: i32) -> (i32, i32, i32) {
    %c0_i32 = arith.constant 0 : i32
    %c0_i32_0 = arith.constant 0 : i32
    %c0_i32_1 = arith.constant 0 : i32
    return %arg0, %c0_i32, %c0_i32_0 : i32, i32, i32
  }
}

</mosaic_0001>

<bundles_post_ra>
// kernel: tpu_custom_call.1
= control target key start
LH: loop header
LB: loop body
LE: loop exit
PB: predicated region body
PF: predicated region fallthrough
CT: control target
= control target key end

     0   :  { %9 = vsyncpa [#allocation4], 0  ;;  %s2428_s0 = inlined_call_operand.hbm [shape: f32[2,8,8,16], index: 0, kind: input, shape index: {}]   ;;  %s2429_s1 = inlined_call_operand.vmem [shape: f32[16,8], index: 1, kind: input, shape index: {}]   ;;  %s2430_s2 = inlined_call_operand.vmem [shape: f32[72,8], index: 2, kind: input, shape index: {}]   ;;  %s2431_s3 = inlined_call_operand.vmem [shape: f32[16,8], index: 3, kind: input, shape index: {}]   ;;  %s2432_s4 = inlined_call_operand.hbm [shape: f32[2,16,64], index: 4, kind: output, shape index: {}]  }
   0x1   :  { %10 = vsyncpa [#allocation5], 0  ;;  %s1669_s15 = smov [#allocation3]  }
   0x2   :  { %s16_s16 = sshll.u32 %s1669_s15, 4  ;;  %s17_s16 = int_to_ptr.vmem [resolvable:$true] %s16_s16 }
   0x3   :  { %s1633_s17 = scalar_lea.vmem %s17_s16, 2048  ;;  %p1638_p1 = scmp.lt.s32.totalorder %s17_s16, %s17_s16 }
   0x4   :  { %p1634_p0 = scmp.ne.s32.totalorder %s17_s16, %s1633_s17  ;;  %p1639_p2 = scmp.lt.s32.totalorder %s1633_s17, %s1633_s17 }
   0x6   :  { %p1640_p3 = por %p1639_p2, %p1638_p1 }
   0x8   :  { %p1641_p4 = pnand %p1640_p3, %p1634_p0 }
   0xa   :  { %1644 = shalt.err (!%p1641_p4)
}
   0xb   :  { %s1670_s18 = smov 128   ;;  %s1671_s19 = smov 8  }
   0xc   :  { %22 = dma.hbm_to_vmem [thread:$0]  %s2428_s0, 2048, %s17_s16, [#allocation4], %s1670_s18, %s1670_s18, %s1671_s19  }
   0xd   :  { %1665 = dma.done.wait [#allocation4], 2048  }
   0xe   :  { %1666 = vsyncadd [#allocation4], 4294965248  ;;  %vm244_vm0 = vcmask 64512   ;;  %vm255_vm1 = vcmask 57344   ;;  %v1672_v0 = vmov 0.0   ;;  %vm246_vm2 = vcmask 58368  }
   0xf   :  { %253 = vst.msk [vmem:[#allocation2 + $0x130] sm:$0xff] %vm244_vm0, %v1672_v0  ;;  %245 = vst.msk [vmem:[#allocation2] sm:$0xff] %vm244_vm0, %v1672_v0  ;;  %vm50_vm3 = vcmask 130048   ;;  %v49_v1 = vld [vmem:[%s2429_s1 + $0x8] sm:$0xff]  ;;  %v48_v2 = vld [vmem:[%s2429_s1] sm:$0xff]  ;;  %s1673_s1 = smov 48  }
  0x10   :  { %248 = vst.msk [vmem:[#allocation2 + $0xa0] sm:$0xff] %vm244_vm0, %v1672_v0  ;;  %251 = vst.msk [vmem:[#allocation2 + $0x90] sm:$0xff] %vm244_vm0, %v1672_v0  ;;  %v32_v3 = vld [vmem:[#allocation3] sm:$0xff]  ;;  %1508 = vmatprep.subr.mxu1 %v49_v1  ;;  %v33_v4 = vld [vmem:[#allocation3 + $0x8] sm:$0xff]  ;;  %vm482_vm4 = vcmask 1045504   ;;  %vm385_vm5 = vcmask 1046528  }
  0x11   :  { %257 = vst.msk [vmem:[#allocation2 + $0x10] sm:$0x1] %vm255_vm1, %v1672_v0  ;;  %258 = vst.msk [vmem:[#allocation2 + $0x20] sm:$0x1] %vm255_vm1, %v1672_v0  ;;  %1512 = vmatprep.mubr.msk.f32.mxu1 %vm50_vm3, %v32_v3  ;;  %1509 = vmatpush3.msra.mxu1 %v49_v1  ;;  %v34_v5 = vld [vmem:[#allocation3 + $0x10] sm:$0xff]  ;;  %v35_v6 = vld [vmem:[#allocation3 + $0x18] sm:$0xff] }
  0x12   :  { %259 = vst.msk [vmem:[#allocation2 + $0x30] sm:$0x1] %vm255_vm1, %v1672_v0  ;;  %260 = vst.msk [vmem:[#allocation2 + $0x40] sm:$0x1] %vm255_vm1, %v1672_v0  ;;  %1510 = vmatprep.subr.mxu1 %v48_v2  ;;  %v36_v10 = vld [vmem:[#allocation3 + $0x20] sm:$0xff]  ;;  %v37_v16 = vld [vmem:[#allocation3 + $0x28] sm:$0xff] }
  0x13   :  { %261 = vst.msk [vmem:[#allocation2 + $0x50] sm:$0x1] %vm255_vm1, %v1672_v0  ;;  %262 = vst.msk [vmem:[#allocation2 + $0x60] sm:$0x1] %vm255_vm1, %v1672_v0  ;;  %1511 = vmatpush3.msra.mxu1 %v48_v2  ;;  %v38_v19 = vld [vmem:[#allocation3 + $0x30] sm:$0xff]  ;;  %s1674_s25 = smov 16  }
  0x14   :  { %263 = vst.msk [vmem:[#allocation2 + $0x70] sm:$0x1] %vm255_vm1, %v1672_v0  ;;  %264 = vst.msk [vmem:[#allocation2 + $0x80] sm:$0x1] %vm255_vm1, %v1672_v0  ;;  %1513 = vmatmul.mubr.msk.f32.vlgmr.msra.gmra.mxu1 %vm50_vm3, %v33_v4  ;;  %v39_v20 = vld [vmem:[#allocation3 + $0x38] sm:$0xff]  ;;  %v40_v21 = vld [vmem:[#allocation3 + $0x40] sm:$0xff] }
  0x15   :  { %267 = vst.msk [vmem:[#allocation2 + $0xb0] sm:$0x1] %vm255_vm1, %v1672_v0  ;;  %268 = vst.msk [vmem:[#allocation2 + $0xc0] sm:$0x1] %vm255_vm1, %v1672_v0  ;;  %1515 = vmatprep.mubr.msk.f32.mxu1 %vm50_vm3, %v34_v5  ;;  %v41_v22 = vld [vmem:[#allocation3 + $0x48] sm:$0xff]  ;;  %v42_v23 = vld [vmem:[#allocation3 + $0x50] sm:$0xff] }
  0x16   :  { %269 = vst.msk [vmem:[#allocation2 + $0xd0] sm:$0x1] %vm255_vm1, %v1672_v0  ;;  %270 = vst.msk [vmem:[#allocation2 + $0xe0] sm:$0x1] %vm255_vm1, %v1672_v0  ;;  %v43_v24 = vld [vmem:[#allocation3 + $0x58] sm:$0xff]  ;;  %v44_v25 = vld [vmem:[#allocation3 + $0x60] sm:$0xff] }
  0x17   :  { %271 = vst.msk [vmem:[#allocation2 + $0xf0] sm:$0x1] %vm255_vm1, %v1672_v0  ;;  %272 = vst.msk [vmem:[#allocation2 + $0x100] sm:$0x1] %vm255_vm1, %v1672_v0  ;;  %v45_v26 = vld [vmem:[#allocation3 + $0x68] sm:$0xff]  ;;  %v46_v27 = vld [vmem:[#allocation3 + $0x70] sm:$0xff] }
  0x18   :  { %273 = vst.msk [vmem:[#allocation2 + $0x110] sm:$0x1] %vm255_vm1, %v1672_v0  ;;  %274 = vst.msk [vmem:[#allocation2 + $0x120] sm:$0x1] %vm255_vm1, %v1672_v0  ;;  %1516 = vmatmul.mubr.msk.f32.gmra.mxu1 %vm50_vm3, %v35_v6  ;;  %v47_v28 = vld [vmem:[#allocation3 + $0x78] sm:$0xff]  ;;  %s1675_s26 = smov 64  }
  0x19   :  { %277 = vst.msk [vmem:[#allocation2 + $0x19] sm:$0x1] %vm255_vm1, %v1672_v0  ;;  %278 = vst.msk [vmem:[#allocation2 + $0x29] sm:$0x1] %vm255_vm1, %v1672_v0  ;;  %1518 = vmatprep.mubr.msk.f32.mxu1 %vm50_vm3, %v36_v10  ;;  %s1676_s27 = smov 56   ;;  %s1677_s28 = smov 24  }
  0x1a   :  { %279 = vst.msk [vmem:[#allocation2 + $0x39] sm:$0x1] %vm255_vm1, %v1672_v0  ;;  %280 = vst.msk [vmem:[#allocation2 + $0x49] sm:$0x1] %vm255_vm1, %v1672_v0  ;;  %s1678_s29 = smov 32   ;;  %s1679_s30 = smov 40  }
  0x1b   :  { %281 = vst.msk [vmem:[#allocation2 + $0x59] sm:$0x1] %vm255_vm1, %v1672_v0  ;;  %282 = vst.msk [vmem:[#allocation2 + $0x69] sm:$0x1] %vm255_vm1, %v1672_v0  ;;  %vm931_vm6 = vcmask 195584   ;;  %vm948_vm7 = vcmask 261120  }
  0x1c   :  { %283 = vst.msk [vmem:[#allocation2 + $0x79] sm:$0x1] %vm255_vm1, %v1672_v0  ;;  %284 = vst.msk [vmem:[#allocation2 + $0x89] sm:$0x1] %vm255_vm1, %v1672_v0  ;;  %1519 = vmatmul.mubr.msk.f32.gmra.mxu1 %vm50_vm3, %v37_v16  ;;  %vm965_vm8 = vcmask 326656   ;;  %vm982_vm9 = vcmask 392192  }
  0x1d   :  { %287 = vst.msk [vmem:[#allocation2 + $0xb9] sm:$0x1] %vm255_vm1, %v1672_v0  ;;  %288 = vst.msk [vmem:[#allocation2 + $0xc9] sm:$0x1] %vm255_vm1, %v1672_v0  ;;  %1521 = vmatprep.mubr.msk.f32.mxu1 %vm50_vm3, %v38_v19  ;;  %vm999_vm10 = vcmask 457728   ;;  %vm1016_vm11 = vcmask 523264  }
  0x1e   :  { %289 = vst.msk [vmem:[#allocation2 + $0xd9] sm:$0x1] %vm255_vm1, %v1672_v0  ;;  %290 = vst.msk [vmem:[#allocation2 + $0xe9] sm:$0x1] %vm255_vm1, %v1672_v0  ;;  %vm1042_vm12 = vcmask 588800  }
  0x1f   :  { %291 = vst.msk [vmem:[#allocation2 + $0xf9] sm:$0x1] %vm255_vm1, %v1672_v0  ;;  %292 = vst.msk [vmem:[#allocation2 + $0x109] sm:$0x1] %vm255_vm1, %v1672_v0 }
  0x20   :  { %293 = vst.msk [vmem:[#allocation2 + $0x119] sm:$0x1] %vm255_vm1, %v1672_v0  ;;  %294 = vst.msk [vmem:[#allocation2 + $0x129] sm:$0x1] %vm255_vm1, %v1672_v0  ;;  %1522 = vmatmul.mubr.msk.f32.gmra.mxu1 %vm50_vm3, %v39_v20 }
  0x21   :  { %275 = vst.msk [vmem:[#allocation2 + $0x130] sm:$0x1] %vm255_vm1, %v1672_v0  ;;  %265 = vst.msk [vmem:[#allocation2 + $0x90] sm:$0x1] %vm255_vm1, %v1672_v0  ;;  %1524 = vmatprep.mubr.msk.f32.mxu1 %vm50_vm3, %v40_v21 }
  0x22   :  { %256 = vst.msk [vmem:[#allocation2] sm:$0x1] %vm255_vm1, %v1672_v0  ;;  %266 = vst.msk [vmem:[#allocation2 + $0xa0] sm:$0x1] %vm255_vm1, %v1672_v0 }
  0x23   :  { %247 = vst.msk [vmem:[#allocation2 + $0x8] sm:$0x3] %vm246_vm2, %v1672_v0  ;;  %249 = vst.msk [vmem:[#allocation2 + $0xa8] sm:$0x3] %vm246_vm2, %v1672_v0 }
  0x24   :  { %252 = vst.msk [vmem:[#allocation2 + $0x98] sm:$0x3] %vm246_vm2, %v1672_v0  ;;  %254 = vst.msk [vmem:[#allocation2 + $0x138] sm:$0x3] %vm246_vm2, %v1672_v0  ;;  %1525 = vmatmul.mubr.msk.f32.gmra.mxu1 %vm50_vm3, %v41_v22  ;;  %v1041_v22 = vld [vmem:[%s2430_s2 + $0x40] sm:$0xff] }
  0x25   :  { %276 = vst.msk [vmem:[#allocation2 + $0x9] sm:$0x1] %vm255_vm1, %v1672_v0  ;;  %285 = vst.msk [vmem:[#allocation2 + $0x99] sm:$0x1] %vm255_vm1, %v1672_v0  ;;  %1527 = vmatprep.mubr.msk.f32.mxu1 %vm50_vm3, %v42_v23  ;;  %v1040_v23 = vld [vmem:[%s2430_s2 + $0x38] sm:$0xff]  ;;  %1536 = vmatprep.subr.mxu1 %v1041_v22 }
  0x26   :  { %286 = vst.msk [vmem:[#allocation2 + $0xa9] sm:$0x1] %vm255_vm1, %v1672_v0  ;;  %295 = vst.msk [vmem:[#allocation2 + $0x139] sm:$0x1] %vm255_vm1, %v1672_v0  ;;  %1537 = vmatpush3.msra.mxu1 %v1041_v22 }
  0x27   :  { %1538 = vmatprep.subr.mxu1 %v1040_v23 }
  0x28   :  { %v1765_v7 = vld [vmem:[#allocation2 + $0x130] sm:$0xff]  ;;  %1528 = vmatmul.mubr.msk.f32.gmra.mxu1 %vm50_vm3, %v43_v24 }
  0x29   :  { %v331_v8 = vld [vmem:[#allocation2 + $0x90] sm:$0xff]  ;;  %v1767_v9 = vld [vmem:[#allocation2] sm:$0xff]  ;;  %771 = vrot.lane.b32.xlu1 %v1765_v7, %s1673_s1  ;;  %1530 = vmatprep.mubr.msk.f32.mxu1 %vm50_vm3, %v44_v25 }
  0x2a   :  { %755 = vrot.lane.b32.xlu0 %v331_v8, %s1673_s1  ;;  %v483_v12 = vrot.slane %v1767_v9, 2  ;;  %v386_v14 = vrot.slane %v1767_v9, 1  ;;  %v1791_v29 = vld [vmem:[#allocation2 + $0xa0] sm:$0xff]  ;;  %v845_v33 = vrot.slane %v331_v8, 2  ;;  %v791_v37 = vrot.slane %v331_v8, 1  ;;  %1539 = vmatpush3.msra.mxu1 %v1040_v23 }
  0x2b   :  { %v507_v31 = vrot.slane %v1791_v29, 2  ;;  %v410_v35 = vrot.slane %v1791_v29, 1 }
  0x2c   :  { %v314_v11 = vld [vmem:[#allocation2 + $0x8] sm:$0x3]  ;;  %1531 = vmatmul.mubr.msk.f32.gmra.mxu1 %vm50_vm3, %v45_v26  ;;  %v332_v38 = vld [vmem:[#allocation2 + $0x98] sm:$0x3] }
  0x2d   :  { %v484_v13 = vrot.slane %v314_v11, 2  ;;  %v387_v15 = vrot.slane %v314_v11, 1  ;;  %1533 = vmatprep.mubr.msk.f32.mxu1 %vm50_vm3, %v46_v27  ;;  %v334_v30 = vld [vmem:[#allocation2 + $0xa8] sm:$0x3]  ;;  %v846_v40 = vrot.slane %v332_v38, 2  ;;  %v792_v41 = vrot.slane %v332_v38, 1 }
  0x2e   :  { %v508_v32 = vrot.slane %v334_v30, 2  ;;  %v411_v36 = vrot.slane %v334_v30, 1  ;;  %v1039_v27 = vld [vmem:[%s2430_s2 + $0x30] sm:$0xff]  ;;  %v1037_v30 = vld [vmem:[%s2430_s2 + $0x20] sm:$0xff]  ;;  %v1034_v38 = vld [vmem:[%s2430_s2 + $0x8] sm:$0xff] }
  0x2f   :  { %v485_v17 = vsel %vm482_vm4, %v483_v12, %v484_v13  ;;  %v388_v18 = vsel %vm385_vm5, %v386_v14, %v387_v15  ;;  %v847_v42 = vsel %vm482_vm4, %v845_v33, %v846_v40  ;;  %v793_v43 = vsel %vm385_vm5, %v791_v37, %v792_v41  ;;  %1540 = vmatprep.subr.mxu1 %v1039_v27 }
  0x30   :  { %531 = vrot.lane.b32.xlu1 %v485_v17, %s1674_s25  ;;  %434 = vrot.lane.b32.xlu0 %v388_v18, %s1671_s19  ;;  %v509_v34 = vsel %vm482_vm4, %v507_v31, %v508_v32  ;;  %v412_v39 = vsel %vm385_vm5, %v410_v35, %v411_v36  ;;  %v1035_v36 = vld [vmem:[%s2430_s2 + $0x10] sm:$0xff] }
  0x31   :  { %1534 = vmatmul.mubr.msk.f32.gmra.mxu1 %vm50_vm3, %v47_v28  ;;  %v1038_v28 = vld [vmem:[%s2430_s2 + $0x28] sm:$0xff] }
  0x32   :  { %1541 = vmatpush3.msra.mxu1 %v1039_v27 }
  0x33   :  { %1542 = vmatprep.subr.mxu1 %v1038_v28 }
  0x34   :  { %547 = vrot.lane.b32.xlu1 %v509_v34, %s1674_s25  ;;  %450 = vrot.lane.b32.xlu0 %v412_v39, %s1671_s19  ;;  %v1036_v34 = vld [vmem:[%s2430_s2 + $0x18] sm:$0xff]  ;;  %v1033_v39 = vld [vmem:[%s2430_s2] sm:$0xff] }
  0x35   :  { %1543 = vmatpush3.msra.mxu1 %v1038_v28 }
  0x36   :  { %1544 = vmatprep.subr.mxu1 %v1037_v30 }
  0x37   :  { %1545 = vmatpush3.msra.mxu1 %v1037_v30 }
  0x38   :  { %865 = vrot.lane.b32.xlu1 %v847_v42, %s1675_s26  ;;  %811 = vrot.lane.b32.xlu0 %v793_v43, %s1676_s27 }
  0x39   :  { %1546 = vmatprep.subr.mxu1 %v1036_v34 }
  0x3a   :  { %1547 = vmatpush3.msra.mxu1 %v1036_v34 }
  0x3b   :  { %1548 = vmatprep.subr.mxu1 %v1035_v36 }
  0x3c   :  { %1549 = vmatpush3.msra.mxu1 %v1035_v36 }
  0x3d   :  { %1550 = vmatprep.subr.mxu1 %v1034_v38 }
  0x3e   :  { %1551 = vmatpush3.msra.mxu1 %v1034_v38 }
  0x3f   :  { %1552 = vmatprep.subr.mxu1 %v1033_v39 }
  0x40   :  { %1553 = vmatpush3.msra.mxu1 %v1033_v39 }
  0xd4   :  { %v1514_v44 = vpop.f32.mrf.mxu1 }
  0xd5   :  { %298 = vst.msk [vmem:[#allocation2 + $0x21] sm:$0xff] %vm244_vm0, %v1514_v44 }
  0xd6   :  { %v165_v45 = vpop.f32.mrf.mxu1 }
  0xd7   :  { %297 = vst.msk [vmem:[#allocation2 + $0x11] sm:$0xff] %vm244_vm0, %v165_v45 }
  0xd8   :  { %v1517_v46 = vpop.f32.mrf.mxu1 }
  0xd9   :  { %300 = vst.msk [vmem:[#allocation2 + $0x41] sm:$0xff] %vm244_vm0, %v1517_v46 }
  0xda   :  { %v175_v47 = vpop.f32.mrf.mxu1 }
  0xdb   :  { %299 = vst.msk [vmem:[#allocation2 + $0x31] sm:$0xff] %vm244_vm0, %v175_v47 }
  0xdc   :  { %v1807_v48 = vld [vmem:[#allocation2 + $0x20] sm:$0xff]  ;;  %v318_v49 = vld [vmem:[#allocation2 + $0x28] sm:$0x3]  ;;  %v1520_v50 = vpop.f32.mrf.mxu1 }
  0xdd   :  { %583 = vrot.lane.b32.xlu1 %v1807_v48, %s1677_s28  ;;  %302 = vst.msk [vmem:[#allocation2 + $0x61] sm:$0xff] %vm244_vm0, %v1520_v50  ;;  %v392_v52 = vrot.slane %v1807_v48, 1  ;;  %v393_v53 = vrot.slane %v318_v49, 1  ;;  %v489_v57 = vrot.slane %v1807_v48, 2  ;;  %v490_v58 = vrot.slane %v318_v49, 2 }
  0xde   :  { %v1812_v51 = vld [vmem:[#allocation2 + $0x10] sm:$0xff]  ;;  %v185_v54 = vpop.f32.mrf.mxu1  ;;  %v316_v63 = vld [vmem:[#allocation2 + $0x18] sm:$0x3] }
  0xdf   :  { %581 = vrot.lane.b32.xlu0 %v1812_v51, %s1677_s28  ;;  %301 = vst.msk [vmem:[#allocation2 + $0x51] sm:$0xff] %vm244_vm0, %v185_v54  ;;  %v394_v56 = vsel %vm385_vm5, %v392_v52, %v393_v53  ;;  %v491_v61 = vsel %vm482_vm4, %v489_v57, %v490_v58  ;;  %v389_v2 = vrot.slane %v1812_v51, 1  ;;  %v390_v3 = vrot.slane %v316_v63, 1 }
  0xe0   :  { %v1523_v55 = vpop.f32.mrf.mxu1  ;;  %v1830_v0 = vld [vmem:[#allocation2 + $0x40] sm:$0xff]  ;;  %v322_v10 = vld [vmem:[#allocation2 + $0x48] sm:$0x3]  ;;  %v486_v11 = vrot.slane %v1812_v51, 2  ;;  %v487_v12 = vrot.slane %v316_v63, 2  ;;  %v1942_v63 = vpop.permute.xlu1 %771 }
  0xe1   :  { %741 = vrot.lane.b32.xlu1 %v1807_v48, %s1673_s1  ;;  %304 = vst.msk [vmem:[#allocation2 + $0x81] sm:$0xff] %vm244_vm0, %v1523_v55  ;;  %v391_v6 = vsel %vm385_vm5, %v389_v2, %v390_v3  ;;  %v398_v14 = vrot.slane %v1830_v0, 1  ;;  %v399_v15 = vrot.slane %v322_v10, 1  ;;  %v495_v18 = vrot.slane %v1830_v0, 2 }
  0xe2   :  { %v195_v59 = vpop.f32.mrf.mxu1  ;;  %v1848_v13 = vld [vmem:[#allocation2 + $0x30] sm:$0xff]  ;;  %v488_v16 = vsel %vm482_vm4, %v486_v11, %v487_v12  ;;  %v496_v19 = vrot.slane %v322_v10, 2  ;;  %v320_v21 = vld [vmem:[#allocation2 + $0x38] sm:$0x3] }
  0xe3   :  { %639 = vrot.lane.b32.xlu0 %v394_v56, %s1678_s29  ;;  %303 = vst.msk [vmem:[#allocation2 + $0x71] sm:$0xff] %vm244_vm0, %v195_v59  ;;  %v400_v17 = vsel %vm385_vm5, %v398_v14, %v399_v15  ;;  %v395_v25 = vrot.slane %v1848_v13, 1  ;;  %v396_v26 = vrot.slane %v320_v21, 1  ;;  %v492_v32 = vrot.slane %v1848_v13, 2 }
  0xe4   :  { %v1526_v60 = vpop.f32.mrf.mxu1  ;;  %v497_v20 = vsel %vm482_vm4, %v495_v18, %v496_v19  ;;  %v1867_v24 = vld [vmem:[#allocation2 + $0x60] sm:$0xff]  ;;  %v493_v33 = vrot.slane %v320_v21, 2  ;;  %v326_v41 = vld [vmem:[#allocation2 + $0x68] sm:$0x3] }
  0xe5   :  { %438 = vrot.lane.b32.xlu1 %v394_v56, %s1671_s19  ;;  %306 = vst.msk [vmem:[#allocation2 + $0xc1] sm:$0xff] %vm244_vm0, %v1526_v60  ;;  %v397_v31 = vsel %vm385_vm5, %v395_v25, %v396_v26  ;;  %v404_v43 = vrot.slane %v1867_v24, 1  ;;  %v405_v44 = vrot.slane %v326_v41, 1  ;;  %v501_v46 = vrot.slane %v1867_v24, 2 }
  0xe6   :  { %v205_v62 = vpop.f32.mrf.mxu1  ;;  %v494_v35 = vsel %vm482_vm4, %v492_v32, %v493_v33  ;;  %v1910_v42 = vld [vmem:[#allocation2 + $0x50] sm:$0xff]  ;;  %v502_v47 = vrot.slane %v326_v41, 2  ;;  %v324_v50 = vld [vmem:[#allocation2 + $0x58] sm:$0x3] }
  0xe7   :  { %693 = vrot.lane.b32.xlu0 %v491_v61, %s1679_s30  ;;  %305 = vst.msk [vmem:[#allocation2 + $0xb1] sm:$0xff] %vm244_vm0, %v205_v62  ;;  %v406_v45 = vsel %vm385_vm5, %v404_v43, %v405_v44  ;;  %v401_v53 = vrot.slane %v1910_v42, 1  ;;  %v402_v54 = vrot.slane %v324_v50, 1  ;;  %v499_v57 = vrot.slane %v324_v50, 2 }
  0xe8   :  { %v1529_v1 = vpop.f32.mrf.mxu1  ;;  %v503_v49 = vsel %vm482_vm4, %v501_v46, %v502_v47  ;;  %v329_v52 = vld [vmem:[#allocation2 + $0x80] sm:$0xff]  ;;  %v330_v59 = vld [vmem:[#allocation2 + $0x88] sm:$0x3] }
  0xe9   :  { %535 = vrot.lane.b32.xlu1 %v491_v61, %s1674_s25  ;;  %308 = vst.msk [vmem:[#allocation2 + $0xe1] sm:$0xff] %vm244_vm0, %v1529_v1  ;;  %v403_v55 = vsel %vm385_vm5, %v401_v53, %v402_v54  ;;  %v686_v62 = vrot.slane %v330_v59, 2  ;;  %v1945_v1 = vpop.permute.xlu0 %755  ;;  %v631_v11 = vrot.slane %v329_v52, 1  ;;  %v632_v12 = vrot.slane %v330_v59, 1 }
  0xea   :  { %v215_v4 = vpop.f32.mrf.mxu1  ;;  %v1938_v60 = vld [vmem:[#allocation2 + $0x70] sm:$0xff]  ;;  %v328_v3 = vld [vmem:[#allocation2 + $0x78] sm:$0x3] }
  0xeb   :  { %587 = vrot.lane.b32.xlu0 %v1830_v0, %s1677_s28  ;;  %307 = vst.msk [vmem:[#allocation2 + $0xd1] sm:$0xff] %vm244_vm0, %v215_v4  ;;  %v504_v15 = vrot.slane %v1938_v60, 2  ;;  %v633_v18 = vsel %vm385_vm5, %v631_v11, %v632_v12 }
  0xec   :  { %v1532_v5 = vpop.f32.mrf.mxu1  ;;  %v1949_v4 = vld [vmem:[#allocation2 + $0xc0] sm:$0xff]  ;;  %v338_v23 = vld [vmem:[#allocation2 + $0xc8] sm:$0x3] }
  0xed   :  { %797 = vrot.lane.b32.xlu1 %v394_v56, %s1676_s27  ;;  %310 = vst.msk [vmem:[#allocation2 + $0x101] sm:$0xff] %vm244_vm0, %v1532_v5  ;;  %v498_v56 = vrot.slane %v1910_v42, 2  ;;  %v1952_v5 = vpop.permute.xlu1 %531  ;;  %v1957_v10 = vpop.permute.xlu0 %434  ;;  %v416_v25 = vrot.slane %v1949_v4, 1  ;;  %v417_v26 = vrot.slane %v338_v23, 1  ;;  %v514_v32 = vrot.slane %v338_v23, 2 }
  0xee   :  { %v225_v8 = vpop.f32.mrf.mxu1  ;;  %v336_v38 = vld [vmem:[#allocation2 + $0xb8] sm:$0x3]  ;;  %v899_v59 = vsel %vm244_vm0, %v1767_v9, %v1957_v10 }
  0xef   :  { %436 = vrot.lane.b32.xlu0 %v391_v6, %s1671_s19  ;;  %309 = vst.msk [vmem:[#allocation2 + $0xf1] sm:$0xff] %vm244_vm0, %v225_v8  ;;  %v500_v58 = vsel %vm482_vm4, %v498_v56, %v499_v57  ;;  %v408_v8 = vrot.slane %v328_v3, 1  ;;  %v418_v30 = vsel %vm385_vm5, %v416_v25, %v417_v26  ;;  %v414_v43 = vrot.slane %v336_v38, 1 }
  0xf0   :  { %v1997_v39 = vld [vmem:[#allocation2 + $0xe0] sm:$0xff]  ;;  %v342_v57 = vld [vmem:[#allocation2 + $0xe8] sm:$0x3] }
  0xf1   :  { %851 = vrot.lane.b32.xlu1 %v491_v61, %s1675_s26  ;;  %v1535_v37 = vpop.f32.mrf.mxu1  ;;  %v685_v61 = vrot.slane %v329_v52, 2  ;;  %v1968_v19 = vpop.permute.xlu0 %450  ;;  %v519_v11 = vrot.slane %v1997_v39, 2  ;;  %v520_v12 = vrot.slane %v342_v57, 2 }
  0xf2   :  { %312 = vst.msk [vmem:[#allocation2 + $0x121] sm:$0xff] %vm244_vm0, %v1535_v37  ;;  %v1995_v37 = vld [vmem:[#allocation2 + $0xb0] sm:$0xff] }
  0xf3   :  { %637 = vrot.lane.b32.xlu0 %v391_v6, %s1678_s29  ;;  %v235_v40 = vpop.f32.mrf.mxu1  ;;  %v687_v2 = vsel %vm482_vm4, %v685_v61, %v686_v62  ;;  %v407_v6 = vrot.slane %v1938_v60, 1  ;;  %v413_v41 = vrot.slane %v1995_v37, 1  ;;  %v510_v47 = vrot.slane %v1995_v37, 2  ;;  %v2029_v61 = vld [vmem:[#allocation2 + $0xd0] sm:$0xff] }
  0xf4   :  { %311 = vst.msk [vmem:[#allocation2 + $0x111] sm:$0xff] %vm244_vm0, %v235_v40  ;;  %v422_v62 = vrot.slane %v1997_v39, 1 }
  0xf5   :  { %745 = vrot.lane.b32.xlu1 %v1830_v0, %s1673_s1  ;;  %v409_v14 = vsel %vm385_vm5, %v407_v6, %v408_v8  ;;  %v1976_v22 = vpop.permute.xlu0 %811  ;;  %v415_v46 = vsel %vm385_vm5, %v413_v41, %v414_v43  ;;  %v915_v6 = vsel %vm50_vm3, %v899_v59, %v1952_v5  ;;  %v516_v43 = vrot.slane %v2029_v61, 2 }
  0xf7   :  { %743 = vrot.lane.b32.xlu0 %v1848_v13, %s1673_s1 }
  0xf9   :  { %533 = vrot.lane.b32.xlu1 %v488_v16, %s1674_s25 }
  0xfb   :  { %442 = vrot.lane.b32.xlu0 %v400_v17, %s1671_s19 }
  0xfd   :  { %691 = vrot.lane.b32.xlu1 %v488_v16, %s1679_s30  ;;  %v505_v16 = vrot.slane %v328_v3, 2 }
  0xff   :  { %697 = vrot.lane.b32.xlu0 %v497_v20, %s1679_s30 }
 0x101   :  { %585 = vrot.lane.b32.xlu1 %v1848_v13, %s1677_s28 }
 0x103   :  { %591 = vrot.lane.b32.xlu0 %v1867_v24, %s1677_s28 }
 0x105   :  { %643 = vrot.lane.b32.xlu1 %v400_v17, %s1678_s29 }
 0x107   :  { %440 = vrot.lane.b32.xlu0 %v397_v31, %s1671_s19 }
 0x109   :  { %539 = vrot.lane.b32.xlu1 %v497_v20, %s1674_s25 }
 0x10b   :  { %537 = vrot.lane.b32.xlu0 %v494_v35, %s1674_s25 }
 0x10d   :  { %801 = vrot.lane.b32.xlu1 %v400_v17, %s1676_s27  ;;  %v1964_v17 = vpop.permute.xlu1 %547 }
 0x10f   :  { %799 = vrot.lane.b32.xlu0 %v397_v31, %s1676_s27 }
 0x111   :  { %855 = vrot.lane.b32.xlu1 %v497_v20, %s1675_s26  ;;  %v506_v20 = vsel %vm482_vm4, %v504_v15, %v505_v16  ;;  %v1973_v21 = vpop.permute.xlu1 %865 }
 0x113   :  { %695 = vrot.lane.b32.xlu0 %v494_v35, %s1679_s30 }
 0x115   :  { %749 = vrot.lane.b32.xlu1 %v1867_v24, %s1673_s1 }
 0x117   :  { %747 = vrot.lane.b32.xlu0 %v1910_v42, %s1673_s1 }
 0x119   :  { %641 = vrot.lane.b32.xlu1 %v397_v31, %s1678_s29  ;;  %v513_v31 = vrot.slane %v1949_v4, 2 }
 0x11b   :  { %446 = vrot.lane.b32.xlu0 %v406_v45, %s1671_s19 }
 0x11d   :  { %853 = vrot.lane.b32.xlu1 %v494_v35, %s1675_s26  ;;  %v515_v35 = vsel %vm482_vm4, %v513_v31, %v514_v32  ;;  %v419_v32 = vrot.slane %v2029_v61, 1 }
 0x11f   :  { %701 = vrot.lane.b32.xlu0 %v503_v49, %s1679_s30 }
 0x121   :  { %589 = vrot.lane.b32.xlu1 %v1910_v42, %s1677_s28 }
 0x123   :  { %595 = vrot.lane.b32.xlu0 %v329_v52, %s1677_s28 }
 0x125   :  { %647 = vrot.lane.b32.xlu1 %v406_v45, %s1678_s29 }
 0x127   :  { %444 = vrot.lane.b32.xlu0 %v403_v55, %s1671_s19 }
 0x129   :  { %543 = vrot.lane.b32.xlu1 %v503_v49, %s1674_s25 }
 0x12b   :  { %541 = vrot.lane.b32.xlu0 %v500_v58, %s1674_s25 }
 0x12d   :  { %805 = vrot.lane.b32.xlu1 %v406_v45, %s1676_s27 }
 0x12f   :  { %803 = vrot.lane.b32.xlu0 %v403_v55, %s1676_s27 }
 0x131   :  { %859 = vrot.lane.b32.xlu1 %v503_v49, %s1675_s26  ;;  %v511_v49 = vrot.slane %v336_v38, 2 }
 0x133   :  { %699 = vrot.lane.b32.xlu0 %v500_v58, %s1679_s30  ;;  %v512_v53 = vsel %vm482_vm4, %v510_v47, %v511_v49 }
 0x135   :  { %753 = vrot.lane.b32.xlu1 %v329_v52, %s1673_s1 }
 0x137   :  { %751 = vrot.lane.b32.xlu0 %v1938_v60, %s1673_s1 }
 0x139   :  { %645 = vrot.lane.b32.xlu1 %v403_v55, %s1678_s29 }
 0x13b   :  { %705 = vrot.lane.b32.xlu0 %v687_v2, %s1679_s30 }
 0x13d   :  { %857 = vrot.lane.b32.xlu1 %v500_v58, %s1675_s26 }
 0x13f   :  { %599 = vrot.lane.b32.xlu0 %v1949_v4, %s1677_s28 }
 0x141   :  { %593 = vrot.lane.b32.xlu1 %v1938_v60, %s1677_s28 }
 0x143   :  { %448 = vrot.lane.b32.xlu0 %v409_v14, %s1671_s19 }
 0x145   :  { %651 = vrot.lane.b32.xlu1 %v633_v18, %s1678_s29 }
 0x147   :  { %545 = vrot.lane.b32.xlu0 %v506_v20, %s1674_s25 }
 0x149   :  { %809 = vrot.lane.b32.xlu1 %v633_v18, %s1676_s27 }
 0x14b   :  { %807 = vrot.lane.b32.xlu0 %v409_v14, %s1676_s27 }
 0x14d   :  { %863 = vrot.lane.b32.xlu1 %v687_v2, %s1675_s26  ;;  %v423_v2 = vrot.slane %v342_v57, 1 }
 0x14f   :  { %v1980_v27 = vpop.permute.xlu1 %583  ;;  %703 = vrot.lane.b32.xlu0 %v506_v20, %s1679_s30  ;;  %v424_v10 = vsel %vm385_vm5, %v422_v62, %v423_v2 }
 0x151   :  { %v582_v28 = vpop.permute.xlu0 %581  ;;  %757 = vrot.lane.b32.xlu1 %v1949_v4, %s1673_s1 }
 0x152   :  { %v932_v9 = vsel %vm931_vm6, %v915_v6, %v582_v28  ;;  %v340_v28 = vld [vmem:[#allocation2 + $0xd8] sm:$0x3] }
 0x153   :  { %v742_v33 = vpop.permute.xlu1 %741  ;;  %454 = vrot.lane.b32.xlu0 %v418_v30, %s1671_s19  ;;  %v517_v47 = vrot.slane %v340_v28, 2 }
 0x155   :  { %v1988_v34 = vpop.permute.xlu0 %639  ;;  %649 = vrot.lane.b32.xlu1 %v409_v14, %s1678_s29 }
 0x157   :  { %v1992_v36 = vpop.permute.xlu1 %438  ;;  %709 = vrot.lane.b32.xlu0 %v515_v35, %s1679_s30 }
 0x159   :  { %v1999_v40 = vpop.permute.xlu0 %693  ;;  %861 = vrot.lane.b32.xlu1 %v506_v20, %s1675_s26  ;;  %v521_v20 = vsel %vm482_vm4, %v519_v11, %v520_v12 }
 0x15b   :  { %v2003_v44 = vpop.permute.xlu1 %535  ;;  %603 = vrot.lane.b32.xlu0 %v1997_v39, %s1677_s28 }
 0x15d   :  { %v2007_v45 = vpop.permute.xlu0 %587  ;;  %597 = vrot.lane.b32.xlu1 %v1995_v37, %s1677_s28 }
 0x15f   :  { %v798_v50 = vpop.permute.xlu1 %797  ;;  %452 = vrot.lane.b32.xlu0 %v415_v46, %s1671_s19 }
 0x161   :  { %v2014_v52 = vpop.permute.xlu0 %436  ;;  %655 = vrot.lane.b32.xlu1 %v418_v30, %s1678_s29 }
 0x163   :  { %v852_v54 = vpop.permute.xlu1 %851  ;;  %549 = vrot.lane.b32.xlu0 %v512_v53, %s1674_s25 }
 0x165   :  { %v638_v55 = vpop.permute.xlu0 %637  ;;  %551 = vrot.lane.b32.xlu1 %v515_v35, %s1674_s25 }
 0x166   :  { %v949_v14 = vsel %vm948_vm7, %v932_v9, %v638_v55  ;;  %v346_v9 = vld [vmem:[#allocation2 + $0x108] sm:$0x3] }
 0x167   :  { %v2020_v56 = vpop.permute.xlu1 %745  ;;  %707 = vrot.lane.b32.xlu0 %v512_v53, %s1679_s30  ;;  %v429_v12 = vrot.slane %v346_v9, 1 }
 0x169   :  { %v2023_v58 = vpop.permute.xlu0 %743  ;;  %813 = vrot.lane.b32.xlu1 %v418_v30, %s1676_s27  ;;  %v2055_v30 = vld [vmem:[#allocation2 + $0x100] sm:$0xff] }
 0x16a   :  { %v428_v11 = vrot.slane %v2055_v30, 1 }
 0x16b   :  { %v534_v3 = vpop.permute.xlu1 %533  ;;  %759 = vrot.lane.b32.xlu0 %v2029_v61, %s1673_s1 }
 0x16d   :  { %v2036_v8 = vpop.permute.xlu0 %442  ;;  %867 = vrot.lane.b32.xlu1 %v515_v35, %s1675_s26 }
 0x16f   :  { %v692_v15 = vpop.permute.xlu1 %691  ;;  %458 = vrot.lane.b32.xlu0 %v424_v10, %s1671_s19 }
 0x170   :  { %v966_v5 = vsel %vm965_vm8, %v949_v14, %v692_v15 }
 0x171   :  { %v983_v16 = vsel %vm982_vm9, %v966_v5, %v742_v33  ;;  %v2046_v18 = vpop.permute.xlu0 %697  ;;  %761 = vrot.lane.b32.xlu1 %v1997_v39, %s1673_s1  ;;  %v420_v33 = vrot.slane %v340_v28, 1 }
 0x172   :  { %v1000_v23 = vsel %vm999_vm10, %v983_v16, %v798_v50  ;;  %v518_v50 = vsel %vm482_vm4, %v516_v43, %v517_v47  ;;  %v2133_v47 = vld [vmem:[#allocation2 + $0x120] sm:$0xff] }
 0x173   :  { %v586_v25 = vpop.permute.xlu1 %585  ;;  %713 = vrot.lane.b32.xlu0 %v521_v20, %s1679_s30  ;;  %v1017_v26 = vsel %vm1016_vm11, %v1000_v23, %v852_v54  ;;  %v421_v41 = vsel %vm385_vm5, %v419_v32, %v420_v33  ;;  %v900_v54 = vsel %vm244_vm0, %v1812_v51, %v2014_v52  ;;  %v901_v52 = vsel %vm244_vm0, %v1807_v48, %v1992_v36 }
 0x174   :  { %1554 = vmatprep.mubr.msk.f32.mxu1 %vm1042_vm12, %v1017_v26  ;;  %v916_v57 = vsel %vm50_vm3, %v900_v54, %v534_v3  ;;  %v526_v23 = vrot.slane %v346_v9, 2 }
 0x175   :  { %v2057_v31 = vpop.permute.xlu0 %591  ;;  %653 = vrot.lane.b32.xlu1 %v415_v46, %s1678_s29  ;;  %v933_v62 = vsel %vm931_vm6, %v916_v57, %v1980_v27  ;;  %v917_v27 = vsel %vm50_vm3, %v901_v52, %v2003_v44  ;;  %v525_v44 = vrot.slane %v2055_v30, 2 }
 0x176   :  { %v950_v51 = vsel %vm948_vm7, %v933_v62, %v1988_v34  ;;  %v934_v14 = vsel %vm931_vm6, %v917_v27, %v586_v25 }
 0x177   :  { %v2061_v35 = vpop.permute.xlu1 %643  ;;  %607 = vrot.lane.b32.xlu0 %v2055_v30, %s1677_s28  ;;  %v967_v34 = vsel %vm965_vm8, %v950_v51, %v1999_v40 }
 0x178   :  { %v984_v16 = vsel %vm982_vm9, %v967_v34, %v2023_v58 }
 0x179   :  { %v2065_v38 = vpop.permute.xlu0 %440  ;;  %601 = vrot.lane.b32.xlu1 %v2029_v61, %s1677_s28 }
 0x17b   :  { %v2071_v49 = vpop.permute.xlu1 %539  ;;  %456 = vrot.lane.b32.xlu0 %v421_v41, %s1671_s19 }
 0x17d   :  { %v2074_v46 = vpop.permute.xlu0 %537  ;;  %659 = vrot.lane.b32.xlu1 %v424_v10, %s1678_s29 }
 0x17f   :  { %v802_v53 = vpop.permute.xlu1 %801  ;;  %553 = vrot.lane.b32.xlu0 %v518_v50, %s1674_s25 }
 0x181   :  { %v800_v55 = vpop.permute.xlu0 %799  ;;  %555 = vrot.lane.b32.xlu1 %v521_v20, %s1674_s25 }
 0x182   :  { %v1001_v25 = vsel %vm999_vm10, %v984_v16, %v800_v55  ;;  %v344_v55 = vld [vmem:[#allocation2 + $0xf8] sm:$0x3] }
 0x183   :  { %v856_v59 = vpop.permute.xlu1 %855  ;;  %815 = vrot.lane.b32.xlu0 %v421_v41, %s1676_s27  ;;  %v523_v51 = vrot.slane %v344_v55, 2 }
 0x185   :  { %v696_v2 = vpop.permute.xlu0 %695  ;;  %817 = vrot.lane.b32.xlu1 %v424_v10, %s1676_s27  ;;  %v2101_v10 = vld [vmem:[#allocation2 + $0xf0] sm:$0xff] }
 0x186   :  { %v425_v57 = vrot.slane %v2101_v10, 1  ;;  %v522_v9 = vrot.slane %v2101_v10, 2 }
 0x187   :  { %v2088_v6 = vpop.permute.xlu1 %749  ;;  %711 = vrot.lane.b32.xlu0 %v518_v50, %s1679_s30 }
 0x189   :  { %v2096_v3 = vpop.permute.xlu0 %747  ;;  %871 = vrot.lane.b32.xlu1 %v521_v20, %s1675_s26  ;;  %v430_v20 = vsel %vm385_vm5, %v428_v11, %v429_v12  ;;  %v524_v11 = vsel %vm482_vm4, %v522_v9, %v523_v51  ;;  %v902_v12 = vsel %vm244_vm0, %v1848_v13, %v2065_v38  ;;  %v903_v13 = vsel %vm244_vm0, %v1830_v0, %v2036_v8 }
 0x18a   :  { %v918_v34 = vsel %vm50_vm3, %v902_v12, %v2074_v46  ;;  %v919_v46 = vsel %vm50_vm3, %v903_v13, %v2071_v49  ;;  %v634_v49 = vrot.slane %v2133_v47, 1  ;;  %v688_v9 = vrot.slane %v2133_v47, 2  ;;  %v352_v13 = vld [vmem:[#allocation2 + $0x138] sm:$0x3] }
 0x18b   :  { %v642_v15 = vpop.permute.xlu1 %641  ;;  %763 = vrot.lane.b32.xlu0 %v2101_v10, %s1673_s1 }
 0x18c   :  { %v951_v48 = vsel %vm948_vm7, %v934_v14, %v642_v15 }
 0x18d   :  { %v968_v36 = vsel %vm965_vm8, %v951_v48, %v696_v2  ;;  %v2111_v5 = vpop.permute.xlu0 %446  ;;  %765 = vrot.lane.b32.xlu1 %v2055_v30, %s1673_s1  ;;  %v935_v48 = vsel %vm931_vm6, %v918_v34, %v2007_v45 }
 0x18e   :  { %v985_v40 = vsel %vm982_vm9, %v968_v36, %v2020_v56  ;;  %v527_v56 = vsel %vm482_vm4, %v525_v44, %v526_v23  ;;  %v952_v44 = vsel %vm948_vm7, %v935_v48, %v2061_v35 }
 0x18f   :  { %v854_v26 = vpop.permute.xlu1 %853  ;;  %462 = vrot.lane.b32.xlu0 %v430_v20, %s1671_s19  ;;  %v1002_v28 = vsel %vm999_vm10, %v985_v40, %v802_v53  ;;  %v350_v40 = vld [vmem:[#allocation2 + $0x128] sm:$0x3]  ;;  %v969_v0 = vsel %vm965_vm8, %v952_v44, %v2046_v18 }
 0x190   :  { %v1018_v32 = vsel %vm1016_vm11, %v1001_v25, %v854_v26  ;;  %v1019_v33 = vsel %vm1016_vm11, %v1002_v28, %v856_v59  ;;  %v426_v59 = vrot.slane %v344_v55, 1  ;;  %v986_v35 = vsel %vm982_vm9, %v969_v0, %v2096_v3  ;;  %v2195_v26 = vld [vmem:[#allocation2 + $0x110] sm:$0xff] }
 0x191   :  { %1555 = vmatmul.mubr.msk.f32.vlgmr.msra.gmra.mxu1 %vm1042_vm12, %v1018_v32  ;;  %v2127_v58 = vpop.permute.xlu0 %701  ;;  %657 = vrot.lane.b32.xlu1 %v421_v41, %s1678_s29  ;;  %v635_v28 = vrot.slane %v350_v40, 1  ;;  %v689_v51 = vrot.slane %v350_v40, 2  ;;  %v795_v40 = vrot.slane %v352_v13, 1 }
 0x192   :  { %1557 = vmatprep.mubr.msk.f32.mxu1 %vm1042_vm12, %v1019_v33  ;;  %v427_v2 = vsel %vm385_vm5, %v425_v57, %v426_v59  ;;  %v431_v57 = vrot.slane %v2195_v26, 1 }
 0x193   :  { %v590_v43 = vpop.permute.xlu1 %589  ;;  %717 = vrot.lane.b32.xlu0 %v527_v56, %s1679_s30  ;;  %v690_v34 = vsel %vm482_vm4, %v688_v9, %v689_v51 }
 0x194   :  { %v936_v45 = vsel %vm931_vm6, %v919_v46, %v590_v43 }
 0x195   :  { %v2135_v53 = vpop.permute.xlu0 %595  ;;  %869 = vrot.lane.b32.xlu1 %v518_v50, %s1675_s26 }
 0x197   :  { %v2138_v54 = vpop.permute.xlu1 %647  ;;  %611 = vrot.lane.b32.xlu0 %v2133_v47, %s1677_s28 }
 0x199   :  { %v2142_v41 = vpop.permute.xlu0 %444  ;;  %605 = vrot.lane.b32.xlu1 %v2101_v10, %s1677_s28 }
 0x19b   :  { %v2147_v62 = vpop.permute.xlu1 %543  ;;  %769 = vrot.lane.b32.xlu0 %v2133_v47, %s1673_s1 }
 0x19d   :  { %v2151_v50 = vpop.permute.xlu0 %541  ;;  %663 = vrot.lane.b32.xlu1 %v430_v20, %s1678_s29 }
 0x19f   :  { %v806_v52 = vpop.permute.xlu1 %805  ;;  %460 = vrot.lane.b32.xlu0 %v427_v2, %s1671_s19 }
 0x1a1   :  { %v804_v27 = vpop.permute.xlu0 %803  ;;  %559 = vrot.lane.b32.xlu1 %v527_v56, %s1674_s25 }
 0x1a2   :  { %v1003_v32 = vsel %vm999_vm10, %v986_v35, %v804_v27 }
 0x1a3   :  { %v860_v14 = vpop.permute.xlu1 %859  ;;  %557 = vrot.lane.b32.xlu0 %v524_v11, %s1674_s25 }
 0x1a5   :  { %v700_v15 = vpop.permute.xlu0 %699  ;;  %821 = vrot.lane.b32.xlu1 %v430_v20, %s1676_s27 }
 0x1a7   :  { %v2168_v36 = vpop.permute.xlu1 %753  ;;  %819 = vrot.lane.b32.xlu0 %v427_v2, %s1676_s27 }
 0x1a9   :  { %v2174_v38 = vpop.permute.xlu0 %751  ;;  %875 = vrot.lane.b32.xlu1 %v527_v56, %s1675_s26  ;;  %v348_v56 = vld [vmem:[#allocation2 + $0x118] sm:$0x3] }
 0x1aa   :  { %v432_v59 = vrot.slane %v348_v56, 1  ;;  %v529_v12 = vrot.slane %v348_v56, 2 }
 0x1ab   :  { %v646_v16 = vpop.permute.xlu1 %645  ;;  %715 = vrot.lane.b32.xlu0 %v524_v11, %s1679_s30 }
 0x1ac   :  { %v953_v20 = vsel %vm948_vm7, %v936_v45, %v646_v16  ;;  %v433_v27 = vsel %vm385_vm5, %v431_v57, %v432_v59  ;;  %v794_v45 = vrot.slane %v1765_v7, 1 }
 0x1ad   :  { %v970_v8 = vsel %vm965_vm8, %v953_v20, %v700_v15  ;;  %v2187_v23 = vpop.permute.xlu0 %705  ;;  %661 = vrot.lane.b32.xlu1 %v427_v2, %s1678_s29  ;;  %v904_v20 = vsel %vm244_vm0, %v1910_v42, %v2142_v41 }
 0x1ae   :  { %v987_v25 = vsel %vm982_vm9, %v970_v8, %v2088_v6  ;;  %v636_v6 = vsel %vm385_vm5, %v634_v49, %v635_v28  ;;  %v920_v8 = vsel %vm50_vm3, %v904_v20, %v2151_v50  ;;  %v848_v49 = vrot.slane %v1765_v7, 2 }
 0x1af   :  { %v858_v18 = vpop.permute.xlu1 %857  ;;  %767 = vrot.lane.b32.xlu0 %v2195_v26, %s1673_s1  ;;  %v1004_v33 = vsel %vm999_vm10, %v987_v25, %v806_v52  ;;  %v796_v25 = vsel %vm385_vm5, %v794_v45, %v795_v40  ;;  %v849_v28 = vrot.slane %v352_v13, 2  ;;  %v937_v42 = vsel %vm931_vm6, %v920_v8, %v2057_v31 }
 0x1b0   :  { %v1020_v43 = vsel %vm1016_vm11, %v1003_v32, %v858_v18  ;;  %v1021_v3 = vsel %vm1016_vm11, %v1004_v33, %v860_v14  ;;  %v954_v18 = vsel %vm948_vm7, %v937_v42, %v2138_v54 }
 0x1b1   :  { %1558 = vmatmul.mubr.msk.f32.gmra.mxu1 %vm1042_vm12, %v1020_v43  ;;  %v2204_v55 = vpop.permute.xlu0 %599  ;;  %873 = vrot.lane.b32.xlu1 %v524_v11, %s1675_s26  ;;  %v528_v11 = vrot.slane %v2195_v26, 2  ;;  %v850_v31 = vsel %vm482_vm4, %v848_v49, %v849_v28 }
 0x1b2   :  { %1560 = vmatprep.mubr.msk.f32.mxu1 %vm1042_vm12, %v1021_v3 }
 0x1b3   :  { %v594_v2 = vpop.permute.xlu1 %593  ;;  %667 = vrot.lane.b32.xlu0 %v636_v6, %s1678_s29  ;;  %v530_v47 = vsel %vm482_vm4, %v528_v11, %v529_v12 }
 0x1b5   :  { %v449_v52 = vpop.permute.xlu0 %448  ;;  %609 = vrot.lane.b32.xlu1 %v2195_v26, %s1677_s28 }
 0x1b6   :  { %v906_v46 = vsel %vm244_vm0, %v1938_v60, %v449_v52 }
 0x1b7   :  { %v652_v14 = vpop.permute.xlu1 %651  ;;  %464 = vrot.lane.b32.xlu0 %v433_v27, %s1671_s19 }
 0x1b9   :  { %v546_v15 = vpop.permute.xlu0 %545  ;;  %721 = vrot.lane.b32.xlu1 %v690_v34, %s1679_s30 }
 0x1ba   :  { %v922_v16 = vsel %vm50_vm3, %v906_v46, %v546_v15 }
 0x1bb   :  { %v810_v48 = vpop.permute.xlu1 %809  ;;  %561 = vrot.lane.b32.xlu0 %v530_v47, %s1674_s25  ;;  %v939_v60 = vsel %vm931_vm6, %v922_v16, %v2135_v53  ;;  %v905_v53 = vsel %vm244_vm0, %v1867_v24, %v2111_v5  ;;  %v971_v5 = vsel %vm965_vm8, %v954_v18, %v2127_v58 }
 0x1bc   :  { %v956_v32 = vsel %vm948_vm7, %v939_v60, %v652_v14  ;;  %v921_v7 = vsel %vm50_vm3, %v905_v53, %v2147_v62  ;;  %v988_v54 = vsel %vm982_vm9, %v971_v5, %v2174_v38 }
 0x1bd   :  { %v808_v44 = vpop.permute.xlu0 %807  ;;  %665 = vrot.lane.b32.xlu1 %v433_v27, %s1678_s29  ;;  %v938_v33 = vsel %vm931_vm6, %v921_v7, %v594_v2  ;;  %v973_v56 = vsel %vm965_vm8, %v956_v32, %v2187_v23 }
 0x1be   :  { %v990_v23 = vsel %vm982_vm9, %v973_v56, %v1945_v1 }
 0x1bf   :  { %v864_v0 = vpop.permute.xlu1 %863  ;;  %823 = vrot.lane.b32.xlu0 %v433_v27, %s1676_s27 }
 0x1c1   :  { %v704_v35 = vpop.permute.xlu0 %703  ;;  %719 = vrot.lane.b32.xlu1 %v530_v47, %s1679_s30 }
 0x1c3   :  { %v758_v41 = vpop.permute.xlu1 %757  ;;  %877 = vrot.lane.b32.xlu0 %v530_v47, %s1675_s26 }
 0x1c5   :  { %v2244_v50 = vpop.permute.xlu0 %454  ;;  %827 = vrot.lane.b32.xlu1 %v796_v25, %s1676_s27 }
 0x1c7   :  { %v650_v43 = vpop.permute.xlu1 %649  ;;  %825 = vrot.lane.b32.xlu0 %v636_v6, %s1676_s27  ;;  %v1005_v6 = vsel %vm999_vm10, %v988_v54, %v808_v44  ;;  %s1680_s27 = smov [#allocation6]  }
 0x1c8   :  { %v955_v24 = vsel %vm948_vm7, %v938_v33, %v650_v43  ;;  %v909_v33 = vsel %vm244_vm0, %v1949_v4, %v2244_v50  ;;  %s1385_s28 = sshll.u32 %s1680_s27, 4  ;;  %s1386_s28 = int_to_ptr.vmem [resolvable:$true] %s1385_s28 }
 0x1c9   :  { %v972_v62 = vsel %vm965_vm8, %v955_v24, %v704_v35  ;;  %v710_v3 = vpop.permute.xlu0 %709  ;;  %881 = vrot.lane.b32.xlu1 %v850_v31, %s1675_s26  ;;  %p1650_p6 = scmp.lt.s32.totalorder %s1386_s28, %s1386_s28 }
 0x1ca   :  { %v989_v57 = vsel %vm982_vm9, %v972_v62, %v2168_v36  ;;  %v1007_v36 = vsel %vm999_vm10, %v990_v23, %v1976_v22  ;;  %v907_v22 = vsel %vm244_vm0, %v1791_v29, %v1968_v19 }
 0x1cb   :  { %v862_v59 = vpop.permute.xlu1 %861  ;;  %879 = vrot.lane.b32.xlu0 %v690_v34, %s1675_s26  ;;  %v1006_v58 = vsel %vm999_vm10, %v989_v57, %v810_v48  ;;  %v1024_v51 = vsel %vm1016_vm11, %v1007_v36, %v1973_v21  ;;  %v923_v21 = vsel %vm50_vm3, %v907_v22, %v1964_v17 }
 0x1cc   :  { %v1022_v2 = vsel %vm1016_vm11, %v1005_v6, %v862_v59  ;;  %v1023_v9 = vsel %vm1016_vm11, %v1006_v58, %v864_v0 }
 0x1cd   :  { %1561 = vmatmul.mubr.msk.f32.gmra.mxu1 %vm1042_vm12, %v1022_v2  ;;  %v2273_v38 = vpop.permute.xlu0 %603 }
 0x1ce   :  { %1563 = vmatprep.mubr.msk.f32.mxu1 %vm1042_vm12, %v1023_v9 }
 0x1cf   :  { %v598_v1 = vpop.permute.xlu1 %597 }
 0x1d0   :  { %v940_v44 = vsel %vm931_vm6, %v923_v21, %v598_v1 }
 0x1d1   :  { %1564 = vmatmul.mubr.msk.f32.gmra.mxu1 %vm1042_vm12, %v1024_v51  ;;  %v453_v52 = vpop.permute.xlu0 %452 }
 0x1d2   :  { %v908_v32 = vsel %vm244_vm0, %v1995_v37, %v453_v52 }
 0x1d3   :  { %v656_v27 = vpop.permute.xlu1 %655 }
 0x1d5   :  { %v550_v11 = vpop.permute.xlu0 %549 }
 0x1d7   :  { %v552_v12 = vpop.permute.xlu1 %551 }
 0x1d8   :  { %v925_v43 = vsel %vm50_vm3, %v909_v33, %v552_v12 }
 0x1d9   :  { %v708_v14 = vpop.permute.xlu0 %707 }
 0x1db   :  { %v814_v34 = vpop.permute.xlu1 %813 }
 0x1dd   :  { %v760_v15 = vpop.permute.xlu0 %759 }
 0x1df   :  { %v868_v47 = vpop.permute.xlu1 %867 }
 0x1e1   :  { %v459_v48 = vpop.permute.xlu0 %458 }
 0x1e2   :  { %v911_v22 = vsel %vm244_vm0, %v1997_v39, %v459_v48 }
 0x1e3   :  { %v762_v13 = vpop.permute.xlu1 %761 }
 0x1e5   :  { %v2284_v46 = vpop.permute.xlu0 %713 }
 0x1e7   :  { %v654_v45 = vpop.permute.xlu1 %653 }
 0x1e8   :  { %v957_v16 = vsel %vm948_vm7, %v940_v44, %v654_v45 }
 0x1e9   :  { %v974_v40 = vsel %vm965_vm8, %v957_v16, %v708_v14  ;;  %v2291_v20 = vpop.permute.xlu0 %607 }
 0x1ea   :  { %v991_v0 = vsel %vm982_vm9, %v974_v40, %v758_v41  ;;  %v924_v41 = vsel %vm50_vm3, %v908_v32, %v550_v11 }
 0x1eb   :  { %v602_v8 = vpop.permute.xlu1 %601  ;;  %v1008_v29 = vsel %vm999_vm10, %v991_v0, %v814_v34  ;;  %v941_v18 = vsel %vm931_vm6, %v924_v41, %v2204_v55 }
 0x1ec   :  { %v1025_v19 = vsel %vm1016_vm11, %v1008_v29, %v868_v47  ;;  %v958_v24 = vsel %vm948_vm7, %v941_v18, %v656_v27  ;;  %v942_v37 = vsel %vm931_vm6, %v925_v43, %v602_v8 }
 0x1ed   :  { %1566 = vmatprep.mubr.msk.f32.mxu1 %vm1042_vm12, %v1025_v19  ;;  %v457_v60 = vpop.permute.xlu0 %456  ;;  %v975_v54 = vsel %vm965_vm8, %v958_v24, %v710_v3 }
 0x1ee   :  { %v992_v23 = vsel %vm982_vm9, %v975_v54, %v760_v15  ;;  %v910_v11 = vsel %vm244_vm0, %v2029_v61, %v457_v60 }
 0x1ef   :  { %v660_v17 = vpop.permute.xlu1 %659 }
 0x1f1   :  { %v554_v35 = vpop.permute.xlu0 %553 }
 0x1f2   :  { %v926_v14 = vsel %vm50_vm3, %v910_v11, %v554_v35 }
 0x1f3   :  { %v556_v49 = vpop.permute.xlu1 %555  ;;  %v943_v15 = vsel %vm931_vm6, %v926_v14, %v2273_v38 }
 0x1f4   :  { %v927_v21 = vsel %vm50_vm3, %v911_v22, %v556_v49  ;;  %v960_v44 = vsel %vm948_vm7, %v943_v15, %v660_v17 }
 0x1f5   :  { %v816_v25 = vpop.permute.xlu0 %815  ;;  %v977_v40 = vsel %vm965_vm8, %v960_v44, %v2284_v46 }
 0x1f6   :  { %v1009_v50 = vsel %vm999_vm10, %v992_v23, %v816_v25 }
 0x1f7   :  { %v818_v28 = vpop.permute.xlu1 %817 }
 0x1f9   :  { %v712_v42 = vpop.permute.xlu0 %711 }
 0x1fb   :  { %v872_v53 = vpop.permute.xlu1 %871 }
 0x1fd   :  { %v764_v7 = vpop.permute.xlu0 %763 }
 0x1fe   :  { %v994_v8 = vsel %vm982_vm9, %v977_v40, %v764_v7  ;;  %v1237_v40 = vld [vmem:[%s2431_s3 + $0x8] sm:$0xff] }
 0x1ff   :  { %v766_v31 = vpop.permute.xlu1 %765 }
 0x201   :  { %v2305_v56 = vpop.permute.xlu0 %462 }
 0x203   :  { %v658_v5 = vpop.permute.xlu1 %657 }
 0x204   :  { %v959_v62 = vsel %vm948_vm7, %v942_v37, %v658_v5 }
 0x205   :  { %v976_v55 = vsel %vm965_vm8, %v959_v62, %v712_v42  ;;  %v718_v57 = vpop.permute.xlu0 %717 }
 0x206   :  { %v993_v4 = vsel %vm982_vm9, %v976_v55, %v762_v13 }
 0x207   :  { %v870_v6 = vpop.permute.xlu1 %869  ;;  %v1010_v59 = vsel %vm999_vm10, %v993_v4, %v818_v28 }
 0x208   :  { %v1026_v58 = vsel %vm1016_vm11, %v1009_v50, %v870_v6  ;;  %v1027_v2 = vsel %vm1016_vm11, %v1010_v59, %v872_v53 }
 0x209   :  { %1567 = vmatmul.mubr.msk.f32.gmra.mxu1 %vm1042_vm12, %v1026_v58  ;;  %v612_v9 = vpop.permute.xlu0 %611 }
 0x20a   :  { %1569 = vmatprep.mubr.msk.f32.mxu1 %vm1042_vm12, %v1027_v2 }
 0x20b   :  { %v606_v3 = vpop.permute.xlu1 %605 }
 0x20c   :  { %v944_v45 = vsel %vm931_vm6, %v927_v21, %v606_v3 }
 0x20d   :  { %v770_v36 = vpop.permute.xlu0 %769 }
 0x20f   :  { %v664_v1 = vpop.permute.xlu1 %663 }
 0x211   :  { %v461_v51 = vpop.permute.xlu0 %460 }
 0x212   :  { %v912_v49 = vsel %vm244_vm0, %v2101_v10, %v461_v51 }
 0x213   :  { %v560_v52 = vpop.permute.xlu1 %559 }
 0x215   :  { %v558_v27 = vpop.permute.xlu0 %557 }
 0x216   :  { %v928_v28 = vsel %vm50_vm3, %v912_v49, %v558_v27 }
 0x217   :  { %v822_v12 = vpop.permute.xlu1 %821  ;;  %v945_v32 = vsel %vm931_vm6, %v928_v28, %v2291_v20  ;;  %v913_v20 = vsel %vm244_vm0, %v2055_v30, %v2305_v56 }
 0x218   :  { %v962_v7 = vsel %vm948_vm7, %v945_v32, %v664_v1  ;;  %v929_v54 = vsel %vm50_vm3, %v913_v20, %v560_v52 }
 0x219   :  { %v820_v34 = vpop.permute.xlu0 %819  ;;  %v979_v43 = vsel %vm965_vm8, %v962_v7, %v718_v57 }
 0x21a   :  { %v1011_v48 = vsel %vm999_vm10, %v994_v8, %v820_v34 }
 0x21b   :  { %v876_v47 = vpop.permute.xlu1 %875 }
 0x21d   :  { %v716_v13 = vpop.permute.xlu0 %715 }
 0x21f   :  { %v662_v16 = vpop.permute.xlu1 %661 }
 0x220   :  { %v961_v61 = vsel %vm948_vm7, %v944_v45, %v662_v16 }
 0x221   :  { %v978_v0 = vsel %vm965_vm8, %v961_v61, %v716_v13  ;;  %v768_v38 = vpop.permute.xlu0 %767 }
 0x222   :  { %v995_v39 = vsel %vm982_vm9, %v978_v0, %v766_v31  ;;  %v996_v24 = vsel %vm982_vm9, %v979_v43, %v768_v38 }
 0x223   :  { %v874_v29 = vpop.permute.xlu1 %873  ;;  %v1012_v19 = vsel %vm999_vm10, %v995_v39, %v822_v12 }
 0x224   :  { %v1028_v60 = vsel %vm1016_vm11, %v1011_v48, %v874_v29  ;;  %v1029_v17 = vsel %vm1016_vm11, %v1012_v19, %v876_v47 }
 0x225   :  { %1570 = vmatmul.mubr.msk.f32.gmra.mxu1 %vm1042_vm12, %v1028_v60  ;;  %v668_v35 = vpop.permute.xlu0 %667 }
 0x226   :  { %1572 = vmatprep.mubr.msk.f32.mxu1 %vm1042_vm12, %v1029_v17 }
 0x227   :  { %v610_v46 = vpop.permute.xlu1 %609 }
 0x228   :  { %v946_v55 = vsel %vm931_vm6, %v929_v54, %v610_v46 }
 0x229   :  { %v465_v25 = vpop.permute.xlu0 %464 }
 0x22a   :  { %v914_v18 = vsel %vm244_vm0, %v2195_v26, %v465_v25 }
 0x22b   :  { %v722_v42 = vpop.permute.xlu1 %721 }
 0x22d   :  { %v562_v53 = vpop.permute.xlu0 %561 }
 0x22e   :  { %v930_v31 = vsel %vm50_vm3, %v914_v18, %v562_v53 }
 0x22f   :  { %v666_v41 = vpop.permute.xlu1 %665  ;;  %v947_v37 = vsel %vm931_vm6, %v930_v31, %v612_v9 }
 0x230   :  { %v964_v57 = vsel %vm948_vm7, %v947_v37, %v668_v35  ;;  %v963_v4 = vsel %vm948_vm7, %v946_v55, %v666_v41 }
 0x231   :  { %v824_v33 = vpop.permute.xlu0 %823  ;;  %v981_v30 = vsel %vm965_vm8, %v964_v57, %v722_v42 }
 0x232   :  { %v1013_v5 = vsel %vm999_vm10, %v996_v24, %v824_v33  ;;  %v998_v58 = vsel %vm982_vm9, %v981_v30, %v1942_v63 }
 0x233   :  { %v720_v10 = vpop.permute.xlu1 %719 }
 0x234   :  { %v980_v50 = vsel %vm965_vm8, %v963_v4, %v720_v10 }
 0x235   :  { %v878_v62 = vpop.permute.xlu0 %877  ;;  %v997_v56 = vsel %vm982_vm9, %v980_v50, %v770_v36  ;;  %v1236_v36 = vld [vmem:[%s2431_s3] sm:$0xff]  ;;  %s1645_s3 = scalar_lea.vmem %s1386_s28, 512 }
 0x236   :  { %v1030_v26 = vsel %vm1016_vm11, %v1013_v5, %v878_v62  ;;  %1610 = vmatprep.mubr.msk.f32.mxu0 %vm244_vm0, %v1236_v36  ;;  %p1646_p5 = scmp.ne.s32.totalorder %s1386_s28, %s1645_s3  ;;  %p1651_p7 = scmp.lt.s32.totalorder %s1645_s3, %s1645_s3 }
 0x237   :  { %v828_v23 = vpop.permute.xlu1 %827  ;;  %1573 = vmatmul.mubr.msk.f32.gmra.mxu1 %vm1042_vm12, %v1030_v26 }
 0x238   :  { %v1015_v3 = vsel %vm999_vm10, %v998_v58, %v828_v23  ;;  %p1652_p8 = por %p1651_p7, %p1650_p6 }
 0x239   :  { %v826_v6 = vpop.permute.xlu0 %825 }
 0x23a   :  { %v1014_v2 = vsel %vm999_vm10, %v997_v56, %v826_v6  ;;  %p1653_p9 = pnand %p1652_p8, %p1646_p5 }
 0x23b   :  { %v882_v59 = vpop.permute.xlu1 %881 }
 0x23c   :  { %v1032_v51 = vsel %vm1016_vm11, %v1015_v3, %v882_v59 }
 0x23d   :  { %v880_v9 = vpop.permute.xlu0 %879 }
 0x23e   :  { %v1031_v1 = vsel %vm1016_vm11, %v1014_v2, %v880_v9 }
 0x23f   :  { %1575 = vmatprep.mubr.msk.f32.mxu1 %vm1042_vm12, %v1031_v1 }
 0x240   :  { %1576 = vmatmul.mubr.msk.f32.gmra.mxu1 %vm1042_vm12, %v1032_v51 }
 0x251   :  { %v1556_v63 = vpop.f32.mrf.mxu1 }
 0x253   :  { %v1157_v52 = vpop.f32.mrf.mxu1 }
 0x271   :  { %v1559_v27 = vpop.f32.mrf.mxu1 }
 0x273   :  { %v1167_v11 = vpop.f32.mrf.mxu1 }
 0x28d   :  { %v1562_v12 = vpop.f32.mrf.mxu1 }
 0x28f   :  { %v1177_v14 = vpop.f32.mrf.mxu1 }
 0x291   :  { %v1565_v34 = vpop.f32.mrf.mxu1 }
 0x293   :  { %v1187_v15 = vpop.f32.mrf.mxu1 }
 0x2c9   :  { %v1568_v47 = vpop.f32.mrf.mxu1 }
 0x2cb   :  { %v1197_v22 = vpop.f32.mrf.mxu1 }
 0x2e5   :  { %v1571_v13 = vpop.f32.mrf.mxu1 }
 0x2e7   :  { %v1207_v21 = vpop.f32.mrf.mxu1 }
 0x2f7   :  { %v1574_v44 = vpop.f32.mrf.mxu1 }
 0x2f9   :  { %v1217_v45 = vpop.f32.mrf.mxu1 }
 0x300   :  { %v1577_v16 = vpop.f32.mrf.mxu1 }
 0x301   :  { %1578 = vmatprep.subr.msk.mxu0 %vm244_vm0, %v1577_v16 }
 0x302   :  { %v1227_v61 = vpop.f32.mrf.mxu1  ;;  %1579 = vmatpush3.xpose.msk.msra.mxu0 %vm244_vm0, %v1577_v16 }
 0x303   :  { %1580 = vmatprep.subr.msk.mxu0 %vm244_vm0, %v1227_v61 }
 0x306   :  { %1581 = vmatpush3.xpose.msk.msra.mxu0 %vm244_vm0, %v1227_v61 }
 0x307   :  { %1582 = vmatprep.subr.msk.mxu0 %vm244_vm0, %v1574_v44 }
 0x30a   :  { %1583 = vmatpush3.xpose.msk.msra.mxu0 %vm244_vm0, %v1574_v44 }
 0x30b   :  { %1584 = vmatprep.subr.msk.mxu0 %vm244_vm0, %v1217_v45 }
 0x30e   :  { %1585 = vmatpush3.xpose.msk.msra.mxu0 %vm244_vm0, %v1217_v45 }
 0x30f   :  { %1586 = vmatprep.subr.msk.mxu0 %vm244_vm0, %v1571_v13 }
 0x312   :  { %1587 = vmatpush3.xpose.msk.msra.mxu0 %vm244_vm0, %v1571_v13 }
 0x313   :  { %1588 = vmatprep.subr.msk.mxu0 %vm244_vm0, %v1207_v21 }
 0x316   :  { %1589 = vmatpush3.xpose.msk.msra.mxu0 %vm244_vm0, %v1207_v21 }
 0x317   :  { %1590 = vmatprep.subr.msk.mxu0 %vm244_vm0, %v1568_v47 }
 0x31a   :  { %1591 = vmatpush3.xpose.msk.msra.mxu0 %vm244_vm0, %v1568_v47 }
 0x31b   :  { %1592 = vmatprep.subr.msk.mxu0 %vm244_vm0, %v1197_v22 }
 0x31e   :  { %1593 = vmatpush3.xpose.msk.msra.mxu0 %vm244_vm0, %v1197_v22 }
 0x31f   :  { %1594 = vmatprep.subr.msk.mxu0 %vm244_vm0, %v1565_v34 }
 0x322   :  { %1595 = vmatpush3.xpose.msk.msra.mxu0 %vm244_vm0, %v1565_v34 }
 0x323   :  { %1596 = vmatprep.subr.msk.mxu0 %vm244_vm0, %v1187_v15 }
 0x326   :  { %1597 = vmatpush3.xpose.msk.msra.mxu0 %vm244_vm0, %v1187_v15 }
 0x327   :  { %1598 = vmatprep.subr.msk.mxu0 %vm244_vm0, %v1562_v12 }
 0x32a   :  { %1599 = vmatpush3.xpose.msk.msra.mxu0 %vm244_vm0, %v1562_v12 }
 0x32b   :  { %1600 = vmatprep.subr.msk.mxu0 %vm244_vm0, %v1177_v14 }
 0x32e   :  { %1601 = vmatpush3.xpose.msk.msra.mxu0 %vm244_vm0, %v1177_v14 }
 0x32f   :  { %1602 = vmatprep.subr.msk.mxu0 %vm244_vm0, %v1559_v27 }
 0x332   :  { %1603 = vmatpush3.xpose.msk.msra.mxu0 %vm244_vm0, %v1559_v27 }
 0x333   :  { %1604 = vmatprep.subr.msk.mxu0 %vm244_vm0, %v1167_v11 }
 0x336   :  { %1605 = vmatpush3.xpose.msk.msra.mxu0 %vm244_vm0, %v1167_v11 }
 0x337   :  { %1606 = vmatprep.subr.msk.mxu0 %vm244_vm0, %v1556_v63 }
 0x33a   :  { %1607 = vmatpush3.xpose.msk.msra.mxu0 %vm244_vm0, %v1556_v63 }
 0x33b   :  { %1608 = vmatprep.subr.msk.mxu0 %vm244_vm0, %v1157_v52 }
 0x33e   :  { %1609 = vmatpush3.xpose.msk.msra.mxu0 %vm244_vm0, %v1157_v52 }
 0x341   :  { %1611 = vmatmul.mubr.msk.f32.vlgmr.msra.gmra.mxu0 %vm244_vm0, %v1237_v40 }
 0x401   :  { %v1612_v0 = vpop.f32.mrf.mxu0 }
 0x402   :  { %1368 = vst.msk [vmem:[#allocation6 + $0x8] sm:$0xff] %vm1016_vm11, %v1612_v0  ;;  %1373 = vrot.lane.b32.xlu1 %v1612_v0, %s1675_s26 }
 0x403   :  { %v1358_v38 = vpop.f32.mrf.mxu0 }
 0x404   :  { %1367 = vst.msk [vmem:[#allocation6] sm:$0xff] %vm1016_vm11, %v1358_v38  ;;  %1371 = vrot.lane.b32.xlu0 %v1358_v38, %s1675_s26 }
 0x474   :  { %v1374_v8 = vpop.permute.xlu1 %1373 }
 0x475   :  { %1379 = vst.msk [vmem:[#allocation6 + $0x18] sm:$0xff] %vm1016_vm11, %v1374_v8 }
 0x476   :  { %v1372_v39 = vpop.permute.xlu0 %1371 }
 0x477   :  { %1378 = vst.msk [vmem:[#allocation6 + $0x10] sm:$0xff] %vm1016_vm11, %v1372_v39 }
 0x478   :  { %1656 = shalt.err (!%p1653_p9)
}
 0x479   :  { %1391 = dma.vmem_to_hbm [thread:$0]  %s1386_s28, 512, %s2432_s4, [#allocation5], %s1670_s18, %s1670_s18, %s1671_s19  }
 0x47a   :  { %1667 = dma.done.wait [#allocation5], 512  }
 0x47b   :  { %1668 = vsyncadd [#allocation5], 4294966784 }
 0x47c   :  { %1395 = vsyncpa [#allocation4], 1 }
 0x47d   :  { %1396 = vsyncpa [#allocation5], 1 }

</bundles_post_ra>
